<compile_context>
chip_gen: v6e
topology: v6e:2x2x1
jax: 0.10.0
libtpu: 0.0.40
codegen_flags: <defaults>
</compile_context>

<pallas_src>
import numpy as np
import jax
import jax.numpy as jnp
from jax.experimental import pallas as pl
from jax.experimental.pallas import tpu as pltpu


# ---------------------------------------------------------------------------
# Graph construction (host-side glue): dense symmetric-normalized adjacency.
# ---------------------------------------------------------------------------
def build_normalized_adjacency():
    adj_list = [[0, 2, 5, 8, 11],
                [0, 1, 4, 7, 10],
                [0, 3, 6, 9, 12, 15],
                [9, 14, 17, 19, 21],
                [9, 13, 16, 18, 20]]
    num_nodes = max(max(s) for s in adj_list) + 1
    A = np.zeros((num_nodes, num_nodes), dtype=np.float32)
    for sub in adj_list:
        for i in range(len(sub)):
            for j in range(i + 1, len(sub)):
                A[sub[i], sub[j]] = 1.0
                A[sub[j], sub[i]] = 1.0
    deg = A.sum(axis=1)
    d_inv_sqrt = 1.0 / np.sqrt(np.clip(deg, 1.0, None))
    A_hat = d_inv_sqrt[:, None] * A * d_inv_sqrt[None, :]
    return A_hat.astype(np.float32), num_nodes


# ---------------------------------------------------------------------------
# Pallas kernel: full T-step recurrence, everything resident in VMEM.
# ---------------------------------------------------------------------------
def gclstm_kernel(gb_ref, a_ref, wblk_ref, out_ref):
    """GC-LSTM recurrence in node-major layout.

    gb_ref   : (N, 4*B*H) f32   gate pre-activation bias, lane layout
                                [gate, batch, H]; i/f/o blocks pre-scaled by 0.5.
    a_ref    : (N, N)     bf16  symmetric-normalized adjacency.
    wblk_ref : (B*H, 4*B*H) bf16 block-diagonal (over batch) GraphConv weight,
                                replicated over the 4 gate blocks, i/f/o blocks
                                pre-scaled by 0.5.
    out_ref  : (N, T*B*H) f32   h_t slabs, time-major along lanes.
    """
    BH = wblk_ref.shape[0]            # B * H
    T = out_ref.shape[1] // BH

    gb = gb_ref[...]                  # (N, 4BH) f32
    A = a_ref[...]                    # (N, N)   bf16
    Wb = wblk_ref[...]                # (BH, 4BH) bf16

    def gates(pre):
        # One EUP tanh pass serves all four gates: the i/f/o lane blocks of
        # `pre` were pre-scaled by 0.5 in the wrapper, so
        # sigmoid(z) = 0.5 * (1 + tanh(z/2)) becomes a scalar *0.5 + 0.5
        # post-affine on the already-sliced blocks (no lane-mask constants).
        g = jnp.tanh(pre)
        i_t = g[:, 0 * BH:1 * BH] * 0.5 + 0.5
        f_t = g[:, 1 * BH:2 * BH] * 0.5 + 0.5
        o_t = g[:, 2 * BH:3 * BH] * 0.5 + 0.5
        c_tl = g[:, 3 * BH:4 * BH]
        return i_t, f_t, o_t, c_tl

    # ---- t = 0 peeled: h0 = c0 = 0, so no matmuls are needed. ----
    i_t, _, o_t, c_tl = gates(gb)
    c = i_t * c_tl
    h = o_t * jnp.tanh(c)
    out_ref[:, 0:BH] = h

    # ---- t = 1 .. T-1: two dependent bf16 MXU matmuls + one EUP pass. ----
    for t in range(1, T):
        hw = jnp.dot(h.astype(jnp.bfloat16), Wb,
                     preferred_element_type=jnp.float32)          # (N, 4BH)
        h_conv = jnp.dot(A, hw.astype(jnp.bfloat16),
                         preferred_element_type=jnp.float32)      # (N, 4BH)
        i_t, f_t, o_t, c_tl = gates(gb + h_conv)
        c = f_t * c + i_t * c_tl
        h = o_t * jnp.tanh(c)
        out_ref[:, t * BH:(t + 1) * BH] = h                       # static lane slice


# ---------------------------------------------------------------------------
# Wrapper: one-time weight/bias packing + lane-dense output un-permute.
# ---------------------------------------------------------------------------
def graph_conv_lstm_forward(x, A_hat, params, seq_len):
    B, _ = x.shape
    N = A_hat.shape[0]
    H = params["wi"].shape[1]
    T = seq_len
    BH = B * H

    # x-side gate pre-activations, computed ONCE (hoisted out of the kernel):
    #   xg[b, g*H + k] = x[b] @ W_g + b_g + b_gcn        gate order g = [i,f,o,c]
    w_cat = jnp.concatenate([params["wi"], params["wf"],
                             params["wo"], params["wc"]], axis=1)        # (Din, 4H)
    b_cat = jnp.concatenate([params["bi"], params["bf"],
                             params["bo"], params["bc"]], axis=1)        # (1, 4H)
    b_cat = b_cat + jnp.tile(params["bg"], (1, 4))     # fold GraphConv bias in
    xg = x @ w_cat + b_cat                                               # (B, 4H)

    # Node-major / gate-major lane layout: columns = [gate, batch, H].
    # Fold the 0.5 sigmoid pre-scale into the i/f/o gate blocks.
    gate_scale = jnp.array([0.5, 0.5, 0.5, 1.0], jnp.float32).reshape(4, 1, 1)
    xg_gbh = xg.reshape(B, 4, H).transpose(1, 0, 2) * gate_scale         # (4, B, H)
    gate_bias = jnp.broadcast_to(xg_gbh.reshape(1, 4 * BH), (N, 4 * BH))

    # GraphConv weight: block-diagonal over the batch, replicated over the 4
    # gate lane blocks, i/f/o blocks pre-scaled by 0.5; bf16 for the MXU.
    w_one = jnp.kron(jnp.eye(B, dtype=jnp.float32), params["wg"])        # (BH, BH)
    w_blk = jnp.concatenate([0.5 * w_one, 0.5 * w_one, 0.5 * w_one, w_one],
                            axis=1).astype(jnp.bfloat16)                 # (BH, 4BH)
    a_bf = A_hat.astype(jnp.bfloat16)                                    # (N, N)

    out_nm = pl.pallas_call(
        gclstm_kernel,
        out_shape=jax.ShapeDtypeStruct((N, T * BH), jnp.float32),
        in_specs=[pl.BlockSpec(memory_space=pltpu.MemorySpace.VMEM)] * 3,
        out_specs=pl.BlockSpec(memory_space=pltpu.MemorySpace.VMEM),
    )(gate_bias, a_bf, w_blk)

    # (N, T*B*H) -> (N, T, B, H) -> (B, T, N, H) -> (B, T*N*H)
    return out_nm.reshape(N, T, B, H).transpose(2, 1, 0, 3).reshape(B, -1)


# ---------------------------------------------------------------------------
# Pure-numpy reference (float64) for a correctness check.
# ---------------------------------------------------------------------------
def reference_forward(x, A_hat, params, seq_len):
    x = np.asarray(x, np.float64)
    A = np.asarray(A_hat, np.float64)
    p = {k: np.asarray(v, np.float64) for k, v in params.items()}
    B = x.shape[0]
    N = A.shape[0]
    H = p["wi"].shape[1]

    x_i = x @ p["wi"] + p["bi"]
    x_f = x @ p["wf"] + p["bf"]
    x_o = x @ p["wo"] + p["bo"]
    x_c = x @ p["wc"] + p["bc"]

    h = np.zeros((B, N, H))
    c = np.zeros((B, N, H))
    outs = []
    for _ in range(seq_len):
        for b in range(B):
            h_conv = A @ h[b] @ p["wg"] + p["bg"]
            i_t = 1.0 / (1.0 + np.exp(-(x_i[b:b + 1] + h_conv)))
            f_t = 1.0 / (1.0 + np.exp(-(x_f[b:b + 1] + h_conv)))
            o_t = 1.0 / (1.0 + np.exp(-(x_o[b:b + 1] + h_conv)))
            c_tilde = np.tanh(x_c[b:b + 1] + h_conv)
            c[b] = f_t * c[b] + i_t * c_tilde
            h[b] = o_t * np.tanh(c[b])
        outs.append(h.copy())
    out = np.stack(outs, axis=1)          # (B, T, N, H)
    return out.reshape(B, -1)


# ---------------------------------------------------------------------------
# Main
# ---------------------------------------------------------------------------
if __name__ == "__main__":
    B = 2          # batch
    D_IN = 32      # input_size (module default)
    H = 32         # hidden_size (TPU-friendly; 4*B*H = 256 lanes)
    T = 8          # seq_len
    A_hat_np, N = build_normalized_adjacency()   # N = 22 skeleton nodes

    key = jax.random.PRNGKey(0)
    ks = jax.random.split(key, 11)

    def linear_init(kw, kb, fan_in, fan_out):
        bound = 1.0 / np.sqrt(fan_in)
        w = jax.random.uniform(kw, (fan_in, fan_out), jnp.float32, -bound, bound)
        b = jax.random.uniform(kb, (1, fan_out), jnp.float32, -bound, bound)
        return w, b

    wi, bi = linear_init(ks[0], ks[1], D_IN, H)
    wf, bf = linear_init(ks[2], ks[3], D_IN, H)
    wo, bo = linear_init(ks[4], ks[5], D_IN, H)
    wc, bc = linear_init(ks[6], ks[7], D_IN, H)
    wg, bg = linear_init(ks[8], ks[9], H, H)      # GraphConv weight/bias

    params = dict(wi=wi, bi=bi, wf=wf, bf=bf, wo=wo, bo=bo,
                  wc=wc, bc=bc, wg=wg, bg=bg)

    x = jax.random.normal(ks[10], (B, D_IN), jnp.float32)
    A_hat = jnp.asarray(A_hat_np)

    out = graph_conv_lstm_forward(x, A_hat, params, T)
    out = jax.block_until_ready(out)

    assert out.shape == (B, T * N * H), out.shape

    ref = reference_forward(np.asarray(x), A_hat_np, params, T)
    # bf16 MXU inputs compound a few-1e-3 absolute error over the 8-step
    # recurrence (activations are bounded / contractive), hence the tolerance.
    err = float(np.max(np.abs(np.asarray(out, np.float64) - ref)))
    assert np.allclose(np.asarray(out, np.float64), ref, atol=2e-2, rtol=2e-2), err

    print("KERNEL_OK")
</pallas_src>

<mosaic_0001>
module attributes {stable_mosaic.version = 11 : i64} {
  func.func @gclstm_kernel(%arg0: memref<22x256xf32, #tpu.memory_space<vmem>>, %arg1: memref<22x22xbf16, #tpu.memory_space<vmem>>, %arg2: memref<64x256xbf16, #tpu.memory_space<vmem>>, %arg3: memref<22x512xf32, #tpu.memory_space<vmem>>) attributes {dimension_semantics = [], scalar_prefetch = 0 : i64, scratch_operands = 0 : i64, tpu.core_type = #tpu.core_type<tc>} {
    %c0 = arith.constant 0 : index
    %c0_0 = arith.constant 0 : index
    %0 = vector.load %arg0[%c0, %c0_0] : memref<22x256xf32, #tpu.memory_space<vmem>>, vector<22x256xf32>
    %c0_1 = arith.constant 0 : index
    %c0_2 = arith.constant 0 : index
    %1 = vector.load %arg1[%c0_1, %c0_2] : memref<22x22xbf16, #tpu.memory_space<vmem>>, vector<22x22xbf16>
    %c0_3 = arith.constant 0 : index
    %c0_4 = arith.constant 0 : index
    %2 = vector.load %arg2[%c0_3, %c0_4] : memref<64x256xbf16, #tpu.memory_space<vmem>>, vector<64x256xbf16>
    %3 = math.tanh %0 : vector<22x256xf32>
    %4 = vector.extract_strided_slice %3 {offsets = [0, 0], sizes = [22, 64], strides = [1, 1]} : vector<22x256xf32> to vector<22x64xf32>
    %cst = arith.constant 5.000000e-01 : f32
    %5 = vector.broadcast %cst : f32 to vector<22x64xf32>
    %6 = arith.mulf %4, %5 : vector<22x64xf32>
    %cst_5 = arith.constant 5.000000e-01 : f32
    %7 = vector.broadcast %cst_5 : f32 to vector<22x64xf32>
    %8 = arith.addf %6, %7 : vector<22x64xf32>
    %9 = vector.extract_strided_slice %3 {offsets = [0, 128], sizes = [22, 64], strides = [1, 1]} : vector<22x256xf32> to vector<22x64xf32>
    %cst_6 = arith.constant 5.000000e-01 : f32
    %10 = vector.broadcast %cst_6 : f32 to vector<22x64xf32>
    %11 = arith.mulf %9, %10 : vector<22x64xf32>
    %cst_7 = arith.constant 5.000000e-01 : f32
    %12 = vector.broadcast %cst_7 : f32 to vector<22x64xf32>
    %13 = arith.addf %11, %12 : vector<22x64xf32>
    %14 = vector.extract_strided_slice %3 {offsets = [0, 192], sizes = [22, 64], strides = [1, 1]} : vector<22x256xf32> to vector<22x64xf32>
    %15 = arith.mulf %8, %14 : vector<22x64xf32>
    %16 = math.tanh %15 : vector<22x64xf32>
    %17 = arith.mulf %13, %16 : vector<22x64xf32>
    %c0_8 = arith.constant 0 : index
    %c0_9 = arith.constant 0 : index
    %18 = vector.load %arg3[%c0_8, %c0_9] : memref<22x512xf32, #tpu.memory_space<vmem>>, vector<22x64xf32>
    tpu.vector_store %arg3[%c0_8, %c0_9], %17 {strides = array<i32>} : memref<22x512xf32, #tpu.memory_space<vmem>>, vector<22x64xf32>,
    %19 = arith.truncf %17 : vector<22x64xf32> to vector<22x64xbf16>
    %cst_10 = arith.constant dense<0.000000e+00> : vector<22x256xf32>
    %20 = tpu.matmul %19, %2, %cst_10 {dimension_numbers = #tpu.dot_dimension_numbers<[1], [0], [0], [1], [0, 0, 1, 1], [], []>} : vector<22x64xbf16>, vector<64x256xbf16>, vector<22x256xf32> -> vector<22x256xf32>
    %21 = arith.truncf %20 : vector<22x256xf32> to vector<22x256xbf16>
    %cst_11 = arith.constant dense<0.000000e+00> : vector<22x256xf32>
    %22 = tpu.matmul %1, %21, %cst_11 {dimension_numbers = #tpu.dot_dimension_numbers<[1], [0], [0], [1], [0, 0, 1, 1], [], []>} : vector<22x22xbf16>, vector<22x256xbf16>, vector<22x256xf32> -> vector<22x256xf32>
    %23 = arith.addf %0, %22 : vector<22x256xf32>
    %24 = math.tanh %23 : vector<22x256xf32>
    %25 = vector.extract_strided_slice %24 {offsets = [0, 0], sizes = [22, 64], strides = [1, 1]} : vector<22x256xf32> to vector<22x64xf32>
    %cst_12 = arith.constant 5.000000e-01 : f32
    %26 = vector.broadcast %cst_12 : f32 to vector<22x64xf32>
    %27 = arith.mulf %25, %26 : vector<22x64xf32>
    %cst_13 = arith.constant 5.000000e-01 : f32
    %28 = vector.broadcast %cst_13 : f32 to vector<22x64xf32>
    %29 = arith.addf %27, %28 : vector<22x64xf32>
    %30 = vector.extract_strided_slice %24 {offsets = [0, 64], sizes = [22, 64], strides = [1, 1]} : vector<22x256xf32> to vector<22x64xf32>
    %cst_14 = arith.constant 5.000000e-01 : f32
    %31 = vector.broadcast %cst_14 : f32 to vector<22x64xf32>
    %32 = arith.mulf %30, %31 : vector<22x64xf32>
    %cst_15 = arith.constant 5.000000e-01 : f32
    %33 = vector.broadcast %cst_15 : f32 to vector<22x64xf32>
    %34 = arith.addf %32, %33 : vector<22x64xf32>
    %35 = vector.extract_strided_slice %24 {offsets = [0, 128], sizes = [22, 64], strides = [1, 1]} : vector<22x256xf32> to vector<22x64xf32>
    %cst_16 = arith.constant 5.000000e-01 : f32
    %36 = vector.broadcast %cst_16 : f32 to vector<22x64xf32>
    %37 = arith.mulf %35, %36 : vector<22x64xf32>
    %cst_17 = arith.constant 5.000000e-01 : f32
    %38 = vector.broadcast %cst_17 : f32 to vector<22x64xf32>
    %39 = arith.addf %37, %38 : vector<22x64xf32>
    %40 = vector.extract_strided_slice %24 {offsets = [0, 192], sizes = [22, 64], strides = [1, 1]} : vector<22x256xf32> to vector<22x64xf32>
    %41 = arith.mulf %34, %15 : vector<22x64xf32>
    %42 = arith.mulf %29, %40 : vector<22x64xf32>
    %43 = arith.addf %41, %42 : vector<22x64xf32>
    %44 = math.tanh %43 : vector<22x64xf32>
    %45 = arith.mulf %39, %44 : vector<22x64xf32>
    %c0_18 = arith.constant 0 : index
    %c64 = arith.constant 64 : index
    %46 = vector.load %arg3[%c0_18, %c64] : memref<22x512xf32, #tpu.memory_space<vmem>>, vector<22x64xf32>
    tpu.vector_store %arg3[%c0_18, %c64], %45 {strides = array<i32>} : memref<22x512xf32, #tpu.memory_space<vmem>>, vector<22x64xf32>,
    %47 = arith.truncf %45 : vector<22x64xf32> to vector<22x64xbf16>
    %cst_19 = arith.constant dense<0.000000e+00> : vector<22x256xf32>
    %48 = tpu.matmul %47, %2, %cst_19 {dimension_numbers = #tpu.dot_dimension_numbers<[1], [0], [0], [1], [0, 0, 1, 1], [], []>} : vector<22x64xbf16>, vector<64x256xbf16>, vector<22x256xf32> -> vector<22x256xf32>
    %49 = arith.truncf %48 : vector<22x256xf32> to vector<22x256xbf16>
    %cst_20 = arith.constant dense<0.000000e+00> : vector<22x256xf32>
    %50 = tpu.matmul %1, %49, %cst_20 {dimension_numbers = #tpu.dot_dimension_numbers<[1], [0], [0], [1], [0, 0, 1, 1], [], []>} : vector<22x22xbf16>, vector<22x256xbf16>, vector<22x256xf32> -> vector<22x256xf32>
    %51 = arith.addf %0, %50 : vector<22x256xf32>
    %52 = math.tanh %51 : vector<22x256xf32>
    %53 = vector.extract_strided_slice %52 {offsets = [0, 0], sizes = [22, 64], strides = [1, 1]} : vector<22x256xf32> to vector<22x64xf32>
    %cst_21 = arith.constant 5.000000e-01 : f32
    %54 = vector.broadcast %cst_21 : f32 to vector<22x64xf32>
    %55 = arith.mulf %53, %54 : vector<22x64xf32>
    %cst_22 = arith.constant 5.000000e-01 : f32
    %56 = vector.broadcast %cst_22 : f32 to vector<22x64xf32>
    %57 = arith.addf %55, %56 : vector<22x64xf32>
    %58 = vector.extract_strided_slice %52 {offsets = [0, 64], sizes = [22, 64], strides = [1, 1]} : vector<22x256xf32> to vector<22x64xf32>
    %cst_23 = arith.constant 5.000000e-01 : f32
    %59 = vector.broadcast %cst_23 : f32 to vector<22x64xf32>
    %60 = arith.mulf %58, %59 : vector<22x64xf32>
    %cst_24 = arith.constant 5.000000e-01 : f32
    %61 = vector.broadcast %cst_24 : f32 to vector<22x64xf32>
    %62 = arith.addf %60, %61 : vector<22x64xf32>
    %63 = vector.extract_strided_slice %52 {offsets = [0, 128], sizes = [22, 64], strides = [1, 1]} : vector<22x256xf32> to vector<22x64xf32>
    %cst_25 = arith.constant 5.000000e-01 : f32
    %64 = vector.broadcast %cst_25 : f32 to vector<22x64xf32>
    %65 = arith.mulf %63, %64 : vector<22x64xf32>
    %cst_26 = arith.constant 5.000000e-01 : f32
    %66 = vector.broadcast %cst_26 : f32 to vector<22x64xf32>
    %67 = arith.addf %65, %66 : vector<22x64xf32>
    %68 = vector.extract_strided_slice %52 {offsets = [0, 192], sizes = [22, 64], strides = [1, 1]} : vector<22x256xf32> to vector<22x64xf32>
    %69 = arith.mulf %62, %43 : vector<22x64xf32>
    %70 = arith.mulf %57, %68 : vector<22x64xf32>
    %71 = arith.addf %69, %70 : vector<22x64xf32>
    %72 = math.tanh %71 : vector<22x64xf32>
    %73 = arith.mulf %67, %72 : vector<22x64xf32>
    %c0_27 = arith.constant 0 : index
    %c128 = arith.constant 128 : index
    %74 = vector.load %arg3[%c0_27, %c128] : memref<22x512xf32, #tpu.memory_space<vmem>>, vector<22x64xf32>
    tpu.vector_store %arg3[%c0_27, %c128], %73 {strides = array<i32>} : memref<22x512xf32, #tpu.memory_space<vmem>>, vector<22x64xf32>,
    %75 = arith.truncf %73 : vector<22x64xf32> to vector<22x64xbf16>
    %cst_28 = arith.constant dense<0.000000e+00> : vector<22x256xf32>
    %76 = tpu.matmul %75, %2, %cst_28 {dimension_numbers = #tpu.dot_dimension_numbers<[1], [0], [0], [1], [0, 0, 1, 1], [], []>} : vector<22x64xbf16>, vector<64x256xbf16>, vector<22x256xf32> -> vector<22x256xf32>
    %77 = arith.truncf %76 : vector<22x256xf32> to vector<22x256xbf16>
    %cst_29 = arith.constant dense<0.000000e+00> : vector<22x256xf32>
    %78 = tpu.matmul %1, %77, %cst_29 {dimension_numbers = #tpu.dot_dimension_numbers<[1], [0], [0], [1], [0, 0, 1, 1], [], []>} : vector<22x22xbf16>, vector<22x256xbf16>, vector<22x256xf32> -> vector<22x256xf32>
    %79 = arith.addf %0, %78 : vector<22x256xf32>
    %80 = math.tanh %79 : vector<22x256xf32>
    %81 = vector.extract_strided_slice %80 {offsets = [0, 0], sizes = [22, 64], strides = [1, 1]} : vector<22x256xf32> to vector<22x64xf32>
    %cst_30 = arith.constant 5.000000e-01 : f32
    %82 = vector.broadcast %cst_30 : f32 to vector<22x64xf32>
    %83 = arith.mulf %81, %82 : vector<22x64xf32>
    %cst_31 = arith.constant 5.000000e-01 : f32
    %84 = vector.broadcast %cst_31 : f32 to vector<22x64xf32>
    %85 = arith.addf %83, %84 : vector<22x64xf32>
    %86 = vector.extract_strided_slice %80 {offsets = [0, 64], sizes = [22, 64], strides = [1, 1]} : vector<22x256xf32> to vector<22x64xf32>
    %cst_32 = arith.constant 5.000000e-01 : f32
    %87 = vector.broadcast %cst_32 : f32 to vector<22x64xf32>
    %88 = arith.mulf %86, %87 : vector<22x64xf32>
    %cst_33 = arith.constant 5.000000e-01 : f32
    %89 = vector.broadcast %cst_33 : f32 to vector<22x64xf32>
    %90 = arith.addf %88, %89 : vector<22x64xf32>
    %91 = vector.extract_strided_slice %80 {offsets = [0, 128], sizes = [22, 64], strides = [1, 1]} : vector<22x256xf32> to vector<22x64xf32>
    %cst_34 = arith.constant 5.000000e-01 : f32
    %92 = vector.broadcast %cst_34 : f32 to vector<22x64xf32>
    %93 = arith.mulf %91, %92 : vector<22x64xf32>
    %cst_35 = arith.constant 5.000000e-01 : f32
    %94 = vector.broadcast %cst_35 : f32 to vector<22x64xf32>
    %95 = arith.addf %93, %94 : vector<22x64xf32>
    %96 = vector.extract_strided_slice %80 {offsets = [0, 192], sizes = [22, 64], strides = [1, 1]} : vector<22x256xf32> to vector<22x64xf32>
    %97 = arith.mulf %90, %71 : vector<22x64xf32>
    %98 = arith.mulf %85, %96 : vector<22x64xf32>
    %99 = arith.addf %97, %98 : vector<22x64xf32>
    %100 = math.tanh %99 : vector<22x64xf32>
    %101 = arith.mulf %95, %100 : vector<22x64xf32>
    %c0_36 = arith.constant 0 : index
    %c192 = arith.constant 192 : index
    %102 = vector.load %arg3[%c0_36, %c192] : memref<22x512xf32, #tpu.memory_space<vmem>>, vector<22x64xf32>
    tpu.vector_store %arg3[%c0_36, %c192], %101 {strides = array<i32>} : memref<22x512xf32, #tpu.memory_space<vmem>>, vector<22x64xf32>,
    %103 = arith.truncf %101 : vector<22x64xf32> to vector<22x64xbf16>
    %cst_37 = arith.constant dense<0.000000e+00> : vector<22x256xf32>
    %104 = tpu.matmul %103, %2, %cst_37 {dimension_numbers = #tpu.dot_dimension_numbers<[1], [0], [0], [1], [0, 0, 1, 1], [], []>} : vector<22x64xbf16>, vector<64x256xbf16>, vector<22x256xf32> -> vector<22x256xf32>
    %105 = arith.truncf %104 : vector<22x256xf32> to vector<22x256xbf16>
    %cst_38 = arith.constant dense<0.000000e+00> : vector<22x256xf32>
    %106 = tpu.matmul %1, %105, %cst_38 {dimension_numbers = #tpu.dot_dimension_numbers<[1], [0], [0], [1], [0, 0, 1, 1], [], []>} : vector<22x22xbf16>, vector<22x256xbf16>, vector<22x256xf32> -> vector<22x256xf32>
    %107 = arith.addf %0, %106 : vector<22x256xf32>
    %108 = math.tanh %107 : vector<22x256xf32>
    %109 = vector.extract_strided_slice %108 {offsets = [0, 0], sizes = [22, 64], strides = [1, 1]} : vector<22x256xf32> to vector<22x64xf32>
    %cst_39 = arith.constant 5.000000e-01 : f32
    %110 = vector.broadcast %cst_39 : f32 to vector<22x64xf32>
    %111 = arith.mulf %109, %110 : vector<22x64xf32>
    %cst_40 = arith.constant 5.000000e-01 : f32
    %112 = vector.broadcast %cst_40 : f32 to vector<22x64xf32>
    %113 = arith.addf %111, %112 : vector<22x64xf32>
    %114 = vector.extract_strided_slice %108 {offsets = [0, 64], sizes = [22, 64], strides = [1, 1]} : vector<22x256xf32> to vector<22x64xf32>
    %cst_41 = arith.constant 5.000000e-01 : f32
    %115 = vector.broadcast %cst_41 : f32 to vector<22x64xf32>
    %116 = arith.mulf %114, %115 : vector<22x64xf32>
    %cst_42 = arith.constant 5.000000e-01 : f32
    %117 = vector.broadcast %cst_42 : f32 to vector<22x64xf32>
    %118 = arith.addf %116, %117 : vector<22x64xf32>
    %119 = vector.extract_strided_slice %108 {offsets = [0, 128], sizes = [22, 64], strides = [1, 1]} : vector<22x256xf32> to vector<22x64xf32>
    %cst_43 = arith.constant 5.000000e-01 : f32
    %120 = vector.broadcast %cst_43 : f32 to vector<22x64xf32>
    %121 = arith.mulf %119, %120 : vector<22x64xf32>
    %cst_44 = arith.constant 5.000000e-01 : f32
    %122 = vector.broadcast %cst_44 : f32 to vector<22x64xf32>
    %123 = arith.addf %121, %122 : vector<22x64xf32>
    %124 = vector.extract_strided_slice %108 {offsets = [0, 192], sizes = [22, 64], strides = [1, 1]} : vector<22x256xf32> to vector<22x64xf32>
    %125 = arith.mulf %118, %99 : vector<22x64xf32>
    %126 = arith.mulf %113, %124 : vector<22x64xf32>
    %127 = arith.addf %125, %126 : vector<22x64xf32>
    %128 = math.tanh %127 : vector<22x64xf32>
    %129 = arith.mulf %123, %128 : vector<22x64xf32>
    %c0_45 = arith.constant 0 : index
    %c256 = arith.constant 256 : index
    %130 = vector.load %arg3[%c0_45, %c256] : memref<22x512xf32, #tpu.memory_space<vmem>>, vector<22x64xf32>
    tpu.vector_store %arg3[%c0_45, %c256], %129 {strides = array<i32>} : memref<22x512xf32, #tpu.memory_space<vmem>>, vector<22x64xf32>,
    %131 = arith.truncf %129 : vector<22x64xf32> to vector<22x64xbf16>
    %cst_46 = arith.constant dense<0.000000e+00> : vector<22x256xf32>
    %132 = tpu.matmul %131, %2, %cst_46 {dimension_numbers = #tpu.dot_dimension_numbers<[1], [0], [0], [1], [0, 0, 1, 1], [], []>} : vector<22x64xbf16>, vector<64x256xbf16>, vector<22x256xf32> -> vector<22x256xf32>
    %133 = arith.truncf %132 : vector<22x256xf32> to vector<22x256xbf16>
    %cst_47 = arith.constant dense<0.000000e+00> : vector<22x256xf32>
    %134 = tpu.matmul %1, %133, %cst_47 {dimension_numbers = #tpu.dot_dimension_numbers<[1], [0], [0], [1], [0, 0, 1, 1], [], []>} : vector<22x22xbf16>, vector<22x256xbf16>, vector<22x256xf32> -> vector<22x256xf32>
    %135 = arith.addf %0, %134 : vector<22x256xf32>
    %136 = math.tanh %135 : vector<22x256xf32>
    %137 = vector.extract_strided_slice %136 {offsets = [0, 0], sizes = [22, 64], strides = [1, 1]} : vector<22x256xf32> to vector<22x64xf32>
    %cst_48 = arith.constant 5.000000e-01 : f32
    %138 = vector.broadcast %cst_48 : f32 to vector<22x64xf32>
    %139 = arith.mulf %137, %138 : vector<22x64xf32>
    %cst_49 = arith.constant 5.000000e-01 : f32
    %140 = vector.broadcast %cst_49 : f32 to vector<22x64xf32>
    %141 = arith.addf %139, %140 : vector<22x64xf32>
    %142 = vector.extract_strided_slice %136 {offsets = [0, 64], sizes = [22, 64], strides = [1, 1]} : vector<22x256xf32> to vector<22x64xf32>
    %cst_50 = arith.constant 5.000000e-01 : f32
    %143 = vector.broadcast %cst_50 : f32 to vector<22x64xf32>
    %144 = arith.mulf %142, %143 : vector<22x64xf32>
    %cst_51 = arith.constant 5.000000e-01 : f32
    %145 = vector.broadcast %cst_51 : f32 to vector<22x64xf32>
    %146 = arith.addf %144, %145 : vector<22x64xf32>
    %147 = vector.extract_strided_slice %136 {offsets = [0, 128], sizes = [22, 64], strides = [1, 1]} : vector<22x256xf32> to vector<22x64xf32>
    %cst_52 = arith.constant 5.000000e-01 : f32
    %148 = vector.broadcast %cst_52 : f32 to vector<22x64xf32>
    %149 = arith.mulf %147, %148 : vector<22x64xf32>
    %cst_53 = arith.constant 5.000000e-01 : f32
    %150 = vector.broadcast %cst_53 : f32 to vector<22x64xf32>
    %151 = arith.addf %149, %150 : vector<22x64xf32>
    %152 = vector.extract_strided_slice %136 {offsets = [0, 192], sizes = [22, 64], strides = [1, 1]} : vector<22x256xf32> to vector<22x64xf32>
    %153 = arith.mulf %146, %127 : vector<22x64xf32>
    %154 = arith.mulf %141, %152 : vector<22x64xf32>
    %155 = arith.addf %153, %154 : vector<22x64xf32>
    %156 = math.tanh %155 : vector<22x64xf32>
    %157 = arith.mulf %151, %156 : vector<22x64xf32>
    %c0_54 = arith.constant 0 : index
    %c320 = arith.constant 320 : index
    %158 = vector.load %arg3[%c0_54, %c320] : memref<22x512xf32, #tpu.memory_space<vmem>>, vector<22x64xf32>
    tpu.vector_store %arg3[%c0_54, %c320], %157 {strides = array<i32>} : memref<22x512xf32, #tpu.memory_space<vmem>>, vector<22x64xf32>,
    %159 = arith.truncf %157 : vector<22x64xf32> to vector<22x64xbf16>
    %cst_55 = arith.constant dense<0.000000e+00> : vector<22x256xf32>
    %160 = tpu.matmul %159, %2, %cst_55 {dimension_numbers = #tpu.dot_dimension_numbers<[1], [0], [0], [1], [0, 0, 1, 1], [], []>} : vector<22x64xbf16>, vector<64x256xbf16>, vector<22x256xf32> -> vector<22x256xf32>
    %161 = arith.truncf %160 : vector<22x256xf32> to vector<22x256xbf16>
    %cst_56 = arith.constant dense<0.000000e+00> : vector<22x256xf32>
    %162 = tpu.matmul %1, %161, %cst_56 {dimension_numbers = #tpu.dot_dimension_numbers<[1], [0], [0], [1], [0, 0, 1, 1], [], []>} : vector<22x22xbf16>, vector<22x256xbf16>, vector<22x256xf32> -> vector<22x256xf32>
    %163 = arith.addf %0, %162 : vector<22x256xf32>
    %164 = math.tanh %163 : vector<22x256xf32>
    %165 = vector.extract_strided_slice %164 {offsets = [0, 0], sizes = [22, 64], strides = [1, 1]} : vector<22x256xf32> to vector<22x64xf32>
    %cst_57 = arith.constant 5.000000e-01 : f32
    %166 = vector.broadcast %cst_57 : f32 to vector<22x64xf32>
    %167 = arith.mulf %165, %166 : vector<22x64xf32>
    %cst_58 = arith.constant 5.000000e-01 : f32
    %168 = vector.broadcast %cst_58 : f32 to vector<22x64xf32>
    %169 = arith.addf %167, %168 : vector<22x64xf32>
    %170 = vector.extract_strided_slice %164 {offsets = [0, 64], sizes = [22, 64], strides = [1, 1]} : vector<22x256xf32> to vector<22x64xf32>
    %cst_59 = arith.constant 5.000000e-01 : f32
    %171 = vector.broadcast %cst_59 : f32 to vector<22x64xf32>
    %172 = arith.mulf %170, %171 : vector<22x64xf32>
    %cst_60 = arith.constant 5.000000e-01 : f32
    %173 = vector.broadcast %cst_60 : f32 to vector<22x64xf32>
    %174 = arith.addf %172, %173 : vector<22x64xf32>
    %175 = vector.extract_strided_slice %164 {offsets = [0, 128], sizes = [22, 64], strides = [1, 1]} : vector<22x256xf32> to vector<22x64xf32>
    %cst_61 = arith.constant 5.000000e-01 : f32
    %176 = vector.broadcast %cst_61 : f32 to vector<22x64xf32>
    %177 = arith.mulf %175, %176 : vector<22x64xf32>
    %cst_62 = arith.constant 5.000000e-01 : f32
    %178 = vector.broadcast %cst_62 : f32 to vector<22x64xf32>
    %179 = arith.addf %177, %178 : vector<22x64xf32>
    %180 = vector.extract_strided_slice %164 {offsets = [0, 192], sizes = [22, 64], strides = [1, 1]} : vector<22x256xf32> to vector<22x64xf32>
    %181 = arith.mulf %174, %155 : vector<22x64xf32>
    %182 = arith.mulf %169, %180 : vector<22x64xf32>
    %183 = arith.addf %181, %182 : vector<22x64xf32>
    %184 = math.tanh %183 : vector<22x64xf32>
    %185 = arith.mulf %179, %184 : vector<22x64xf32>
    %c0_63 = arith.constant 0 : index
    %c384 = arith.constant 384 : index
    %186 = vector.load %arg3[%c0_63, %c384] : memref<22x512xf32, #tpu.memory_space<vmem>>, vector<22x64xf32>
    tpu.vector_store %arg3[%c0_63, %c384], %185 {strides = array<i32>} : memref<22x512xf32, #tpu.memory_space<vmem>>, vector<22x64xf32>,
    %187 = arith.truncf %185 : vector<22x64xf32> to vector<22x64xbf16>
    %cst_64 = arith.constant dense<0.000000e+00> : vector<22x256xf32>
    %188 = tpu.matmul %187, %2, %cst_64 {dimension_numbers = #tpu.dot_dimension_numbers<[1], [0], [0], [1], [0, 0, 1, 1], [], []>} : vector<22x64xbf16>, vector<64x256xbf16>, vector<22x256xf32> -> vector<22x256xf32>
    %189 = arith.truncf %188 : vector<22x256xf32> to vector<22x256xbf16>
    %cst_65 = arith.constant dense<0.000000e+00> : vector<22x256xf32>
    %190 = tpu.matmul %1, %189, %cst_65 {dimension_numbers = #tpu.dot_dimension_numbers<[1], [0], [0], [1], [0, 0, 1, 1], [], []>} : vector<22x22xbf16>, vector<22x256xbf16>, vector<22x256xf32> -> vector<22x256xf32>
    %191 = arith.addf %0, %190 : vector<22x256xf32>
    %192 = math.tanh %191 : vector<22x256xf32>
    %193 = vector.extract_strided_slice %192 {offsets = [0, 0], sizes = [22, 64], strides = [1, 1]} : vector<22x256xf32> to vector<22x64xf32>
    %cst_66 = arith.constant 5.000000e-01 : f32
    %194 = vector.broadcast %cst_66 : f32 to vector<22x64xf32>
    %195 = arith.mulf %193, %194 : vector<22x64xf32>
    %cst_67 = arith.constant 5.000000e-01 : f32
    %196 = vector.broadcast %cst_67 : f32 to vector<22x64xf32>
    %197 = arith.addf %195, %196 : vector<22x64xf32>
    %198 = vector.extract_strided_slice %192 {offsets = [0, 64], sizes = [22, 64], strides = [1, 1]} : vector<22x256xf32> to vector<22x64xf32>
    %cst_68 = arith.constant 5.000000e-01 : f32
    %199 = vector.broadcast %cst_68 : f32 to vector<22x64xf32>
    %200 = arith.mulf %198, %199 : vector<22x64xf32>
    %cst_69 = arith.constant 5.000000e-01 : f32
    %201 = vector.broadcast %cst_69 : f32 to vector<22x64xf32>
    %202 = arith.addf %200, %201 : vector<22x64xf32>
    %203 = vector.extract_strided_slice %192 {offsets = [0, 128], sizes = [22, 64], strides = [1, 1]} : vector<22x256xf32> to vector<22x64xf32>
    %cst_70 = arith.constant 5.000000e-01 : f32
    %204 = vector.broadcast %cst_70 : f32 to vector<22x64xf32>
    %205 = arith.mulf %203, %204 : vector<22x64xf32>
    %cst_71 = arith.constant 5.000000e-01 : f32
    %206 = vector.broadcast %cst_71 : f32 to vector<22x64xf32>
    %207 = arith.addf %205, %206 : vector<22x64xf32>
    %208 = vector.extract_strided_slice %192 {offsets = [0, 192], sizes = [22, 64], strides = [1, 1]} : vector<22x256xf32> to vector<22x64xf32>
    %209 = arith.mulf %202, %183 : vector<22x64xf32>
    %210 = arith.mulf %197, %208 : vector<22x64xf32>
    %211 = arith.addf %209, %210 : vector<22x64xf32>
    %212 = math.tanh %211 : vector<22x64xf32>
    %213 = arith.mulf %207, %212 : vector<22x64xf32>
    %c0_72 = arith.constant 0 : index
    %c448 = arith.constant 448 : index
    %214 = vector.load %arg3[%c0_72, %c448] : memref<22x512xf32, #tpu.memory_space<vmem>>, vector<22x64xf32>
    tpu.vector_store %arg3[%c0_72, %c448], %213 {strides = array<i32>} : memref<22x512xf32, #tpu.memory_space<vmem>>, vector<22x64xf32>,
    return
  }
}

</mosaic_0001>

<bundles_post_ra>
// kernel: tpu_custom_call.1
= control target key start
LH: loop header
LB: loop body
LE: loop exit
PB: predicated region body
PF: predicated region fallthrough
CT: control target
= control target key end

     0   :  { %8 = vsyncpa [#allocation3], 0  ;;  %s2479_s0 = inlined_call_operand.hbm [shape: f32[22,256], index: 0, kind: input, shape index: {}]   ;;  %s2480_s1 = inlined_call_operand.hbm [shape: bf16[22,22], index: 1, kind: input, shape index: {}]   ;;  %s2481_s2 = inlined_call_operand.hbm [shape: bf16[64,256], index: 2, kind: input, shape index: {}]   ;;  %s2482_s3 = inlined_call_operand.hbm [shape: f32[22,512], index: 3, kind: output, shape index: {}]  }
   0x1   :  { %9 = vsyncpa [#allocation6], 0 }
   0x2   :  { %10 = vsyncpa [#allocation4], 0  ;;  %s1958_s12 = smov [#allocation5]  }
   0x3   :  { %s28_s13 = sshll.u32 %s1958_s12, 4  ;;  %s29_s13 = int_to_ptr.vmem [resolvable:$true] %s28_s13 }
   0x4   :  { %s1880_s14 = scalar_lea.vmem %s29_s13, 192  ;;  %p1885_p1 = scmp.lt.s32.totalorder %s29_s13, %s29_s13 }
   0x5   :  { %p1881_p0 = scmp.ne.s32.totalorder %s29_s13, %s1880_s14  ;;  %p1886_p2 = scmp.lt.s32.totalorder %s1880_s14, %s1880_s14 }
   0x7   :  { %p1887_p3 = por %p1886_p2, %p1885_p1 }
   0x9   :  { %p1888_p4 = pnand %p1887_p3, %p1881_p0 }
   0xb   :  { %1891 = shalt.err (!%p1888_p4)
}
   0xc   :  { %s1959_s15 = smov 64   ;;  %s1960_s16 = smov 4  }
   0xd   :  { %34 = dma.hbm_to_vmem [thread:$0]  %s2480_s1, 192, %s29_s13, [#allocation6], %s1959_s15, %s1959_s15, %s1960_s16  }
   0xe   :  { %s1961_s19 = smov [#allocation2]  }
   0xf   :  { %s16_s20 = sshll.u32 %s1961_s19, 4  ;;  %s17_s20 = int_to_ptr.vmem [resolvable:$true] %s16_s20 }
  0x10   :  { %s1900_s21 = scalar_lea.vmem %s17_s20, 768  ;;  %p1905_p6 = scmp.lt.s32.totalorder %s17_s20, %s17_s20 }
  0x11   :  { %p1901_p5 = scmp.ne.s32.totalorder %s17_s20, %s1900_s21  ;;  %p1906_p7 = scmp.lt.s32.totalorder %s1900_s21, %s1900_s21 }
  0x13   :  { %p1907_p8 = por %p1906_p7, %p1905_p6 }
  0x15   :  { %p1908_p9 = pnand %p1907_p8, %p1901_p5 }
  0x17   :  { %1911 = shalt.err (!%p1908_p9)
}
  0x18   :  { %s1962_s22 = smov 256   ;;  %s1963_s23 = smov 16  }
  0x19   :  { %22 = dma.hbm_to_vmem [thread:$0]  %s2479_s0, 768, %s17_s20, [#allocation3], %s1962_s22, %s1962_s22, %s1963_s23  }
  0x1a   :  { %s1964_s26 = smov [#allocation7]  }
  0x1b   :  { %s40_s27 = sshll.u32 %s1964_s26, 4  ;;  %s41_s27 = int_to_ptr.vmem [resolvable:$true] %s40_s27 }
  0x1c   :  { %s1920_s1 = scalar_lea.vmem %s41_s27, 1024  ;;  %p1925_p11 = scmp.lt.s32.totalorder %s41_s27, %s41_s27 }
  0x1d   :  { %p1921_p10 = scmp.ne.s32.totalorder %s41_s27, %s1920_s1  ;;  %p1926_p12 = scmp.lt.s32.totalorder %s1920_s1, %s1920_s1 }
  0x1f   :  { %p1927_p13 = por %p1926_p12, %p1925_p11 }
  0x21   :  { %p1928_p0 = pnand %p1927_p13, %p1921_p10 }
  0x23   :  { %1931 = shalt.err (!%p1928_p0)
}
  0x24   :  { %s1965_s28 = smov 128   ;;  %s1966_s29 = smov 8  }
  0x25   :  { %46 = dma.hbm_to_vmem [thread:$0]  %s2481_s2, 1024, %s41_s27, [#allocation6], %s1965_s28, %s1965_s28, %s1966_s29  }
  0x26   :  { %1952 = dma.done.wait [#allocation3], 768  }
  0x27   :  { %1953 = vsyncadd [#allocation3], 4294966528 }
  0x28   :  { %1954 = dma.done.wait [#allocation6], 1216  }
  0x29   :  { %1955 = vsyncadd [#allocation6], 4294966080  ;;  %v2002_v0 = vld [vmem:[#allocation2 + $0x8] sm:$0xff]  ;;  %v2004_v1 = vld [vmem:[#allocation2 + $0x18] sm:$0xff]  ;;  %v1967_v7 = vmov 0   ;;  %vm113_vm0 = vcmask 523264  }
  0x2a   :  { %v2006_v2 = vld [vmem:[#allocation2 + $0x28] sm:$0x3f]  ;;  %1712 = vtanh.f32 %v2002_v0  ;;  %v2011_v3 = vld [vmem:[#allocation7 + $0x34] ss:$8 sps:$4 sm:$0xff]   ;;  %v2019_v6 = vld [vmem:[#allocation7 + $0x20] ss:$8 sps:$4 sm:$0xff]   ;;  %198 = vmatprep.mubr.bf16.mxu0 %v1967_v7  ;;  %275 = vmatprep.mubr.bf16.mxu1 %v1967_v7 }
  0x2b   :  { %1714 = vtanh.f32 %v2004_v1  ;;  %v2013_v4 = vld [vmem:[#allocation7 + $0x30] ss:$8 sps:$4 sm:$0xff]   ;;  %v2015_v5 = vld [vmem:[#allocation7 + $0x24] ss:$8 sps:$4 sm:$0xff]   ;;  %174 = vmatprep.subr.bf16.mxu0 %v2011_v3  ;;  %v2023_v8 = vld [vmem:[#allocation7 + $0x14] ss:$8 sps:$4 sm:$0xff]  }
  0x2c   :  { %1716 = vtanh.f32 %v2006_v2  ;;  %175 = vmatpush1.bf16.msra.mxu0 %v2013_v4  ;;  %v2028_v11 = vld [vmem:[#allocation7 + $0x10] ss:$8 sps:$4 sm:$0xff]   ;;  %v2031_v13 = vld [vmem:[#allocation7 + $0x4] ss:$8 sps:$4 sm:$0xff]   ;;  %v2036_v14 = vld [vmem:[#allocation7] ss:$8 sps:$4 sm:$0xff]  }
  0x2d   :  { %176 = vmatprep.subr.bf16.mxu0 %v2015_v5  ;;  %v2040_v15 = vld [vmem:[#allocation2] sm:$0xff]  ;;  %v2045_v17 = vld [vmem:[#allocation2 + $0x10] sm:$0xff]  ;;  %vm116_vm1 = vcmask 521216   ;;  %vm236_vm2 = vcmask 1042432   ;;  %vm229_vm3 = vcmask 179200   ;;  %vm393_vm4 = vcmask 1048064  }
  0x2e   :  { %v2042_v16 = vld [vmem:[#allocation2 + $0x20] sm:$0x3f]  ;;  %1718 = vtanh.f32 %v2040_v15  ;;  %v2067_v60 = vld [vmem:[#allocation5] sm:$0xff]   ;;  %v2075_v61 = vld [vmem:[#allocation5 + $0x8] ss:$0 sps:$4 sm:$0x77]  }
  0x2f   :  { %1720 = vtanh.f32 %v2042_v16  ;;  %vm396_vm5 = vcmask 1046016   ;;  %s1968_s0 = smov [#allocation8]  }
  0x30   :  { %177 = vmatpush1.bf16.msra.mxu0 %v2019_v6  ;;  %1722 = vtanh.f32 %v2045_v17  ;;  %s1627_s2 = sshll.u32 %s1968_s0, 4  ;;  %s1628_s2 = int_to_ptr.vmem [resolvable:$true] %s1627_s2 }
  0x31   :  { %178 = vmatprep.subr.bf16.mxu0 %v2023_v8  ;;  %s1932_s5 = scalar_lea.vmem %s1628_s2, 1536  ;;  %p1937_p2 = scmp.lt.s32.totalorder %s1628_s2, %s1628_s2 }
  0x32   :  { %p1933_p1 = scmp.ne.s32.totalorder %s1628_s2, %s1932_s5  ;;  %p1938_p3 = scmp.lt.s32.totalorder %s1932_s5, %s1932_s5 }
  0x34   :  { %179 = vmatpush1.bf16.msra.mxu0 %v2028_v11  ;;  %p1939_p4 = por %p1938_p3, %p1937_p2 }
  0x35   :  { %180 = vmatprep.subr.bf16.mxu0 %v2031_v13 }
  0x36   :  { %p1940_p5 = pnand %p1939_p4, %p1933_p1 }
  0x37   :  { %v1713_v9 = vpop.eup %1712 }
  0x38   :  { %v1715_v10 = vpop.eup %1714  ;;  %95 = vrot.lane.b32.xlu0 %v1713_v9, %s1959_s15  ;;  %181 = vmatpush1.bf16.msra.mxu0 %v2036_v14  ;;  %v86_v33 = vmul.f32 0.5, %v1713_v9 }
  0x39   :  { %v1717_v12 = vpop.eup %1716  ;;  %v87_v35 = vmul.f32 0.5, %v1715_v10 }
  0x3a   :  { %99 = vrot.lane.b32.xlu1 %v1717_v12, %s1959_s15  ;;  %v88_v34 = vmul.f32 0.5, %v1717_v12  ;;  %v89_v36 = vadd.f32 0.5, %v86_v33 }
  0x3b   :  { %v1719_v18 = vpop.eup %1718  ;;  %v90_v39 = vadd.f32 0.5, %v87_v35 }
  0x3c   :  { %97 = vrot.lane.b32.xlu0 %v1715_v10, %s1959_s15  ;;  %v1721_v19 = vpop.eup %1720  ;;  %v80_v20 = vmul.f32 0.5, %v1719_v18  ;;  %v91_v37 = vadd.f32 0.5, %v88_v34 }
  0x3d   :  { %v1723_v21 = vpop.eup %1722  ;;  %v82_v22 = vmul.f32 0.5, %v1721_v19 }
  0x3e   :  { %v83_v23 = vadd.f32 0.5, %v80_v20  ;;  %v81_v24 = vmul.f32 0.5, %v1723_v21 }
  0x3f   :  { %v85_v25 = vadd.f32 0.5, %v82_v22 }
  0x40   :  { %v84_v28 = vadd.f32 0.5, %v81_v24 }
  0xaa   :  { %v96_v26 = vpop.permute.xlu0 %95 }
  0xab   :  { %v2049_v27 = vmul.f32 %v96_v26, %v83_v23 }
  0xac   :  { %v100_v29 = vpop.permute.xlu1 %99 }
  0xad   :  { %1724 = vtanh.f32 %v2049_v27  ;;  %v2052_v30 = vmul.f32 %v100_v29, %v85_v25 }
  0xae   :  { %v98_v31 = vpop.permute.xlu0 %97 }
  0xaf   :  { %v2054_v32 = vmul.f32 %v98_v31, %v84_v28  ;;  %1726 = vtanh.f32 %v2052_v30 }
  0xb1   :  { %1728 = vtanh.f32 %v2054_v32 }
  0xba   :  { %v1725_v38 = vpop.eup %1724 }
  0xbb   :  { %v110_v40 = vmul.f32 %v1725_v38, %v89_v36 }
  0xbc   :  { %v1727_v41 = vpop.eup %1726 }
  0xbd   :  { %114 = vst.msk [vmem:[#allocation8] sm:$0xff] %vm113_vm0, %v110_v40  ;;  %v112_v42 = vmul.f32 %v1727_v41, %v91_v37 }
  0xbe   :  { %v1729_v43 = vpop.eup %1728 }
  0xbf   :  { %v111_v44 = vmul.f32 %v1729_v43, %v90_v39  ;;  %117 = vst.msk [vmem:[#allocation8 + $0x40] sm:$0x3f] %vm116_vm1, %v112_v42  ;;  %v119_v46 = vpack.c.bf16 %v112_v42, %v112_v42 }
  0xc1   :  { %v118_v45 = vpack.c.bf16 %v111_v44, %v110_v40  ;;  %115 = vst.msk [vmem:[#allocation8 + $0x20] sm:$0xff] %vm113_vm0, %v111_v44 }
  0xc3   :  { %1648 = vmatmul.mubr.msk.bf16.vlgmr.msra.gmra.mxu0 %vm113_vm0, %v118_v45 }
  0xc4   :  { %208 = vmatprep.mubr.bf16.mxu0 %v1967_v7 }
  0xcb   :  { %1649 = vmatmul.mubr.msk.bf16.gmra.mxu0 %vm113_vm0, %v119_v46 }
  0xcc   :  { %499 = vmatprep.mubr.bf16.mxu0 %v1967_v7 }
 0x183   :  { %v200_v47 = vpop.f32.mrf.mxu0 }
 0x185   :  { %v202_v48 = vpop.f32.mrf.mxu0 }
 0x187   :  { %v204_v49 = vpop.f32.mrf.mxu0 }
 0x188   :  { %v217_v59 = vpack.c.bf16 %v204_v49, %v200_v47 }
 0x189   :  { %v206_v50 = vpop.f32.mrf.mxu0 }
 0x18a   :  { %v218_v56 = vpack.c.bf16 %v206_v50, %v202_v48 }
 0x18b   :  { %v210_v51 = vpop.f32.mrf.mxu0 }
 0x18c   :  { %v219_v52 = vpack.c.bf16 %v210_v51, %v210_v51 }
 0x18d   :  { %v212_v53 = vpop.f32.mrf.mxu0 }
 0x18e   :  { %v220_v54 = vpack.c.bf16 %v212_v53, %v212_v53  ;;  %v238_v57 = vsel %vm236_vm2, %v219_v52, 0 }
 0x18f   :  { %v214_v55 = vpop.f32.mrf.mxu0 }
 0x190   :  { %1652 = vmatprep.subr.msk.bf16.mxu1 %vm236_vm2, %v220_v54 }
 0x191   :  { %v215_v58 = vpop.f32.mrf.mxu0  ;;  %256 = vmatpush1.bf16.msra.mxu1 %v238_v57 }
 0x192   :  { %257 = vmatprep.subr.bf16.mxu1 %v218_v56 }
 0x195   :  { %258 = vmatpush1.bf16.msra.mxu1 %v217_v59 }
 0x196   :  { %414 = vmatprep.subr.bf16.mxu1 %v2011_v3 }
 0x198   :  { %1653 = vmatmul.mubr.msk.bf16.vlgmr.msra.gmra.mxu1 %vm229_vm3, %v2067_v60 }
 0x199   :  { %285 = vmatprep.mubr.bf16.mxu1 %v1967_v7  ;;  %415 = vmatpush1.bf16.msra.mxu1 %v2013_v4 }
 0x19a   :  { %416 = vmatprep.subr.bf16.mxu1 %v2015_v5 }
 0x19d   :  { %417 = vmatpush1.bf16.msra.mxu1 %v2019_v6 }
 0x19e   :  { %418 = vmatprep.subr.bf16.mxu1 %v2023_v8 }
 0x1a0   :  { %1654 = vmatmul.mubr.msk.bf16.gmra.mxu1 %vm229_vm3, %v2075_v61 }
 0x1a1   :  { %419 = vmatpush1.bf16.msra.mxu1 %v2028_v11  ;;  %438 = vmatprep.mubr.bf16.mxu1 %v1967_v7 }
 0x1a2   :  { %420 = vmatprep.subr.bf16.mxu1 %v2031_v13 }
 0x1a5   :  { %421 = vmatpush1.bf16.msra.mxu1 %v2036_v14 }
 0x1a6   :  { %612 = vmatprep.subr.bf16.mxu1 %v2011_v3 }
 0x258   :  { %v277_v62 = vpop.f32.mrf.mxu1 }
 0x259   :  { %v294_v28 = vadd.f32 %v277_v62, %v2040_v15 }
 0x25a   :  { %v279_v63 = vpop.f32.mrf.mxu1 }
 0x25b   :  { %v295_v9 = vadd.f32 %v279_v63, %v2002_v0 }
 0x25c   :  { %v281_v10 = vpop.f32.mrf.mxu1 }
 0x25d   :  { %1730 = vtanh.f32 %v295_v9  ;;  %v296_v29 = vadd.f32 %v281_v10, %v2045_v17 }
 0x25e   :  { %v283_v12 = vpop.f32.mrf.mxu1 }
 0x25f   :  { %v297_v18 = vadd.f32 %v283_v12, %v2004_v1 }
 0x260   :  { %v287_v19 = vpop.f32.mrf.mxu1 }
 0x261   :  { %1732 = vtanh.f32 %v297_v18  ;;  %v298_v31 = vadd.f32 %v287_v19, %v2042_v16 }
 0x262   :  { %v289_v20 = vpop.f32.mrf.mxu1 }
 0x263   :  { %v299_v21 = vadd.f32 %v289_v20, %v2006_v2 }
 0x264   :  { %v291_v22 = vpop.f32.mrf.mxu1 }
 0x265   :  { %1734 = vtanh.f32 %v299_v21 }
 0x266   :  { %v292_v23 = vpop.f32.mrf.mxu1  ;;  %1736 = vtanh.f32 %v294_v28 }
 0x267   :  { %1738 = vtanh.f32 %v296_v29 }
 0x268   :  { %1740 = vtanh.f32 %v298_v31 }
 0x26a   :  { %v1731_v24 = vpop.eup %1730 }
 0x26b   :  { %336 = vrot.lane.b32.xlu1 %v1731_v24, %s1959_s15  ;;  %v312_v62 = vmul.f32 0.5, %v1731_v24 }
 0x26d   :  { %v315_v10 = vadd.f32 0.5, %v312_v62 }
 0x26e   :  { %v1733_v25 = vpop.eup %1732 }
 0x26f   :  { %338 = vrot.lane.b32.xlu0 %v1733_v25, %s1959_s15  ;;  %v313_v63 = vmul.f32 0.5, %v1733_v25 }
 0x271   :  { %v316_v12 = vadd.f32 0.5, %v313_v63 }
 0x272   :  { %v1735_v26 = vpop.eup %1734 }
 0x273   :  { %321 = vrot.lane.b32.xlu0 %v2049_v27, %s1959_s15  ;;  %340 = vrot.lane.b32.xlu1 %v1735_v26, %s1959_s15  ;;  %v1737_v33 = vpop.eup %1736  ;;  %v314_v21 = vmul.f32 0.5, %v1735_v26 }
 0x274   :  { %v306_v34 = vmul.f32 0.5, %v1737_v33  ;;  %v1739_v35 = vpop.eup %1738 }
 0x275   :  { %v307_v37 = vmul.f32 0.5, %v1739_v35  ;;  %v1741_v27 = vpop.eup %1740  ;;  %v317_v28 = vadd.f32 0.5, %v314_v21 }
 0x276   :  { %v309_v36 = vadd.f32 0.5, %v306_v34  ;;  %v308_v40 = vmul.f32 0.5, %v1741_v27 }
 0x277   :  { %323 = vrot.lane.b32.xlu1 %v2054_v32, %s1959_s15  ;;  %v310_v32 = vadd.f32 0.5, %v307_v37 }
 0x278   :  { %v311_v43 = vadd.f32 0.5, %v308_v40 }
 0x2dd   :  { %v337_v38 = vpop.permute.xlu1 %336 }
 0x2de   :  { %v345_v39 = vmul.f32 %v337_v38, %v309_v36 }
 0x2e0   :  { %351 = vrot.lane.b32.xlu0 %v345_v39, %s1959_s15 }
 0x2e1   :  { %v339_v41 = vpop.permute.xlu0 %338 }
 0x2e2   :  { %v346_v42 = vmul.f32 %v339_v41, %v310_v32 }
 0x2e4   :  { %325 = vrot.lane.b32.xlu0 %v2052_v30, %s1959_s15  ;;  %353 = vrot.lane.b32.xlu1 %v346_v42, %s1959_s15 }
 0x2e5   :  { %v341_v44 = vpop.permute.xlu1 %340  ;;  %v322_v46 = vpop.permute.xlu0 %321 }
 0x2e6   :  { %v347_v45 = vmul.f32 %v341_v44, %v311_v43  ;;  %v330_v47 = vmul.f32 %v322_v46, %v309_v36 }
 0x2e8   :  { %355 = vrot.lane.b32.xlu1 %v347_v45, %s1959_s15 }
 0x2e9   :  { %v324_v48 = vpop.permute.xlu1 %323 }
 0x2ea   :  { %v331_v51 = vmul.f32 %v324_v48, %v310_v32 }
 0x352   :  { %v352_v49 = vpop.permute.xlu0 %351 }
 0x353   :  { %v2104_v50 = vadd.f32 %v352_v49, %v330_v47 }
 0x355   :  { %1742 = vtanh.f32 %v2104_v50 }
 0x356   :  { %v326_v52 = vpop.permute.xlu0 %325  ;;  %v354_v53 = vpop.permute.xlu1 %353 }
 0x357   :  { %v2107_v54 = vadd.f32 %v354_v53, %v331_v51  ;;  %v332_v30 = vmul.f32 %v326_v52, %v311_v43 }
 0x359   :  { %1744 = vtanh.f32 %v2107_v54 }
 0x35a   :  { %v356_v55 = vpop.permute.xlu1 %355 }
 0x35b   :  { %v2110_v56 = vadd.f32 %v356_v55, %v332_v30 }
 0x35d   :  { %1746 = vtanh.f32 %v2110_v56 }
 0x362   :  { %v1743_v57 = vpop.eup %1742 }
 0x363   :  { %369 = vrot.lane.b32.xlu0 %v1743_v57, %s1959_s15 }
 0x366   :  { %v1745_v58 = vpop.eup %1744 }
 0x367   :  { %371 = vrot.lane.b32.xlu1 %v1745_v58, %s1959_s15 }
 0x36a   :  { %v1747_v59 = vpop.eup %1746 }
 0x36b   :  { %373 = vrot.lane.b32.xlu0 %v1747_v59, %s1959_s15 }
 0x3d5   :  { %v370_v9 = vpop.permute.xlu0 %369 }
 0x3d6   :  { %v2116_v19 = vmul.f32 %v370_v9, %v315_v10 }
 0x3d9   :  { %v372_v18 = vpop.permute.xlu1 %371 }
 0x3da   :  { %v2118_v20 = vmul.f32 %v372_v18, %v316_v12 }
 0x3dc   :  { %v398_v22 = vpack.c.bf16 %v2118_v20, %v2116_v19 }
 0x3dd   :  { %v374_v23 = vpop.permute.xlu0 %373 }
 0x3de   :  { %1655 = vmatmul.mubr.msk.bf16.vlgmr.msra.gmra.mxu1 %vm113_vm0, %v398_v22  ;;  %v2125_v24 = vmul.f32 %v374_v23, %v317_v28 }
 0x3df   :  { %448 = vmatprep.mubr.bf16.mxu1 %v1967_v7  ;;  %613 = vmatpush1.bf16.msra.mxu1 %v2013_v4 }
 0x3e0   :  { %614 = vmatprep.subr.bf16.mxu1 %v2015_v5  ;;  %v399_v25 = vpack.c.bf16 %v2125_v24, %v2125_v24 }
 0x3e3   :  { %615 = vmatpush1.bf16.msra.mxu1 %v2019_v6 }
 0x3e4   :  { %616 = vmatprep.subr.bf16.mxu1 %v2023_v8 }
 0x3e6   :  { %1656 = vmatmul.mubr.msk.bf16.gmra.mxu1 %vm113_vm0, %v399_v25 }
 0x3e7   :  { %617 = vmatpush1.bf16.msra.mxu1 %v2028_v11  ;;  %636 = vmatprep.mubr.bf16.mxu1 %v1967_v7 }
 0x3e8   :  { %618 = vmatprep.subr.bf16.mxu1 %v2031_v13 }
 0x3eb   :  { %619 = vmatpush1.bf16.msra.mxu1 %v2036_v14 }
 0x3ec   :  { %822 = vmatprep.subr.bf16.mxu1 %v2011_v3 }
 0x49e   :  { %v440_v26 = vpop.f32.mrf.mxu1 }
 0x4a0   :  { %v442_v29 = vpop.f32.mrf.mxu1 }
 0x4a2   :  { %v444_v31 = vpop.f32.mrf.mxu1 }
 0x4a3   :  { %v457_v40 = vpack.c.bf16 %v444_v31, %v440_v26 }
 0x4a4   :  { %v446_v33 = vpop.f32.mrf.mxu1 }
 0x4a5   :  { %v458_v38 = vpack.c.bf16 %v446_v33, %v442_v29 }
 0x4a6   :  { %v450_v34 = vpop.f32.mrf.mxu1 }
 0x4a7   :  { %v459_v35 = vpack.c.bf16 %v450_v34, %v450_v34 }
 0x4a8   :  { %v452_v36 = vpop.f32.mrf.mxu1 }
 0x4a9   :  { %v460_v37 = vpack.c.bf16 %v452_v36, %v452_v36  ;;  %v462_v39 = vsel %vm236_vm2, %v459_v35, 0 }
 0x4aa   :  { %v454_v27 = vpop.f32.mrf.mxu1 }
 0x4ab   :  { %1657 = vmatprep.subr.msk.bf16.mxu0 %vm236_vm2, %v460_v37 }
 0x4ac   :  { %v455_v32 = vpop.f32.mrf.mxu1  ;;  %480 = vmatpush1.bf16.msra.mxu0 %v462_v39 }
 0x4ad   :  { %481 = vmatprep.subr.bf16.mxu0 %v458_v38 }
 0x4b0   :  { %482 = vmatpush1.bf16.msra.mxu0 %v457_v40 }
 0x4b3   :  { %1658 = vmatmul.mubr.msk.bf16.vlgmr.msra.gmra.mxu0 %vm229_vm3, %v2067_v60 }
 0x4b4   :  { %509 = vmatprep.mubr.bf16.mxu0 %v1967_v7 }
 0x4bb   :  { %1659 = vmatmul.mubr.msk.bf16.gmra.mxu0 %vm229_vm3, %v2075_v61 }
 0x4bc   :  { %697 = vmatprep.mubr.bf16.mxu0 %v1967_v7 }
 0x573   :  { %v501_v41 = vpop.f32.mrf.mxu0 }
 0x574   :  { %v518_v57 = vadd.f32 %v501_v41, %v2040_v15 }
 0x575   :  { %v503_v42 = vpop.f32.mrf.mxu0 }
 0x576   :  { %v519_v43 = vadd.f32 %v503_v42, %v2002_v0 }
 0x577   :  { %v505_v44 = vpop.f32.mrf.mxu0 }
 0x578   :  { %1748 = vtanh.f32 %v519_v43  ;;  %v520_v58 = vadd.f32 %v505_v44, %v2045_v17 }
 0x579   :  { %v507_v45 = vpop.f32.mrf.mxu0 }
 0x57a   :  { %v521_v46 = vadd.f32 %v507_v45, %v2004_v1 }
 0x57b   :  { %v511_v47 = vpop.f32.mrf.mxu0 }
 0x57c   :  { %1750 = vtanh.f32 %v521_v46  ;;  %v522_v59 = vadd.f32 %v511_v47, %v2042_v16 }
 0x57d   :  { %v513_v48 = vpop.f32.mrf.mxu0 }
 0x57e   :  { %v523_v49 = vadd.f32 %v513_v48, %v2006_v2 }
 0x57f   :  { %v515_v51 = vpop.f32.mrf.mxu0 }
 0x580   :  { %1752 = vtanh.f32 %v523_v49 }
 0x581   :  { %v516_v52 = vpop.f32.mrf.mxu0  ;;  %1754 = vtanh.f32 %v518_v57 }
 0x582   :  { %1756 = vtanh.f32 %v520_v58 }
 0x583   :  { %1758 = vtanh.f32 %v522_v59 }
 0x585   :  { %v1749_v53 = vpop.eup %1748 }
 0x586   :  { %548 = vrot.lane.b32.xlu1 %v1749_v53, %s1959_s15 }
 0x589   :  { %v1751_v30 = vpop.eup %1750 }
 0x58a   :  { %550 = vrot.lane.b32.xlu0 %v1751_v30, %s1959_s15  ;;  %v537_v44 = vmul.f32 0.5, %v1751_v30 }
 0x58d   :  { %v1753_v55 = vpop.eup %1752 }
 0x58e   :  { %552 = vrot.lane.b32.xlu1 %v1753_v55, %s1959_s15  ;;  %v1755_v62 = vpop.eup %1754  ;;  %v538_v47 = vmul.f32 0.5, %v1753_v55 }
 0x58f   :  { %v530_v63 = vmul.f32 0.5, %v1755_v62  ;;  %v1757_v9 = vpop.eup %1756 }
 0x590   :  { %v531_v12 = vmul.f32 0.5, %v1757_v9  ;;  %v1759_v18 = vpop.eup %1758  ;;  %v541_v52 = vadd.f32 0.5, %v538_v47 }
 0x591   :  { %v533_v10 = vadd.f32 0.5, %v530_v63  ;;  %v532_v28 = vmul.f32 0.5, %v1759_v18 }
 0x592   :  { %v534_v23 = vadd.f32 0.5, %v531_v12 }
 0x593   :  { %v535_v29 = vadd.f32 0.5, %v532_v28  ;;  %v542_v34 = vmul.f32 %v533_v10, %v2104_v50 }
 0x594   :  { %v543_v37 = vmul.f32 %v534_v23, %v2107_v54  ;;  %v536_v54 = vmul.f32 0.5, %v1749_v53 }
 0x595   :  { %v544_v39 = vmul.f32 %v535_v29, %v2110_v56  ;;  %v540_v56 = vadd.f32 0.5, %v537_v44 }
 0x596   :  { %v539_v43 = vadd.f32 0.5, %v536_v54 }
 0x5f8   :  { %v549_v21 = vpop.permute.xlu1 %548 }
 0x5f9   :  { %v557_v22 = vmul.f32 %v549_v21, %v533_v10 }
 0x5fb   :  { %563 = vrot.lane.b32.xlu0 %v557_v22, %s1959_s15 }
 0x5fc   :  { %v551_v25 = vpop.permute.xlu0 %550 }
 0x5fd   :  { %v558_v26 = vmul.f32 %v551_v25, %v534_v23 }
 0x5ff   :  { %565 = vrot.lane.b32.xlu1 %v558_v26, %s1959_s15 }
 0x600   :  { %v553_v31 = vpop.permute.xlu1 %552 }
 0x601   :  { %v559_v33 = vmul.f32 %v553_v31, %v535_v29 }
 0x603   :  { %567 = vrot.lane.b32.xlu0 %v559_v33, %s1959_s15 }
 0x66d   :  { %v564_v35 = vpop.permute.xlu0 %563 }
 0x66e   :  { %v2159_v36 = vadd.f32 %v564_v35, %v542_v34 }
 0x670   :  { %1760 = vtanh.f32 %v2159_v36 }
 0x671   :  { %v566_v27 = vpop.permute.xlu1 %565 }
 0x672   :  { %v2163_v38 = vadd.f32 %v566_v27, %v543_v37 }
 0x674   :  { %1762 = vtanh.f32 %v2163_v38 }
 0x675   :  { %v568_v32 = vpop.permute.xlu0 %567 }
 0x676   :  { %v2167_v40 = vadd.f32 %v568_v32, %v544_v39 }
 0x678   :  { %1764 = vtanh.f32 %v2167_v40 }
 0x67d   :  { %v1761_v50 = vpop.eup %1760 }
 0x67e   :  { %581 = vrot.lane.b32.xlu1 %v1761_v50, %s1959_s15 }
 0x681   :  { %v1763_v41 = vpop.eup %1762 }
 0x682   :  { %583 = vrot.lane.b32.xlu0 %v1763_v41, %s1959_s15 }
 0x685   :  { %v1765_v42 = vpop.eup %1764 }
 0x686   :  { %585 = vrot.lane.b32.xlu1 %v1765_v42, %s1959_s15 }
 0x6f0   :  { %v582_v45 = vpop.permute.xlu1 %581 }
 0x6f1   :  { %v590_v46 = vmul.f32 %v582_v45, %v539_v43 }
 0x6f3   :  { %593 = vst.msk [vmem:[#allocation8 + $0x8] sm:$0xff] %vm113_vm0, %v590_v46 }
 0x6f4   :  { %v584_v48 = vpop.permute.xlu0 %583 }
 0x6f5   :  { %v591_v49 = vmul.f32 %v584_v48, %v540_v56 }
 0x6f7   :  { %594 = vst.msk [vmem:[#allocation8 + $0x28] sm:$0xff] %vm113_vm0, %v591_v49  ;;  %v596_v51 = vpack.c.bf16 %v591_v49, %v590_v46 }
 0x6f8   :  { %v586_v57 = vpop.permute.xlu1 %585 }
 0x6f9   :  { %v592_v58 = vmul.f32 %v586_v57, %v541_v52  ;;  %1660 = vmatmul.mubr.msk.bf16.vlgmr.msra.gmra.mxu1 %vm113_vm0, %v596_v51 }
 0x6fa   :  { %646 = vmatprep.mubr.bf16.mxu1 %v1967_v7  ;;  %823 = vmatpush1.bf16.msra.mxu1 %v2013_v4 }
 0x6fb   :  { %595 = vst.msk [vmem:[#allocation8 + $0x48] sm:$0x3f] %vm116_vm1, %v592_v58  ;;  %824 = vmatprep.subr.bf16.mxu1 %v2015_v5  ;;  %v597_v53 = vpack.c.bf16 %v592_v58, %v592_v58 }
 0x6fe   :  { %825 = vmatpush1.bf16.msra.mxu1 %v2019_v6 }
 0x6ff   :  { %826 = vmatprep.subr.bf16.mxu1 %v2023_v8 }
 0x701   :  { %1661 = vmatmul.mubr.msk.bf16.gmra.mxu1 %vm113_vm0, %v597_v53 }
 0x702   :  { %827 = vmatpush1.bf16.msra.mxu1 %v2028_v11  ;;  %846 = vmatprep.mubr.bf16.mxu1 %v1967_v7 }
 0x703   :  { %828 = vmatprep.subr.bf16.mxu1 %v2031_v13 }
 0x706   :  { %829 = vmatpush1.bf16.msra.mxu1 %v2036_v14 }
 0x707   :  { %1020 = vmatprep.subr.bf16.mxu1 %v2011_v3 }
 0x7b9   :  { %v638_v30 = vpop.f32.mrf.mxu1 }
 0x7bb   :  { %v640_v55 = vpop.f32.mrf.mxu1 }
 0x7bd   :  { %v642_v59 = vpop.f32.mrf.mxu1 }
 0x7be   :  { %v655_v28 = vpack.c.bf16 %v642_v59, %v638_v30 }
 0x7bf   :  { %v644_v62 = vpop.f32.mrf.mxu1 }
 0x7c0   :  { %v656_v21 = vpack.c.bf16 %v644_v62, %v640_v55 }
 0x7c1   :  { %v648_v63 = vpop.f32.mrf.mxu1 }
 0x7c2   :  { %v657_v9 = vpack.c.bf16 %v648_v63, %v648_v63 }
 0x7c3   :  { %v650_v10 = vpop.f32.mrf.mxu1 }
 0x7c4   :  { %v658_v12 = vpack.c.bf16 %v650_v10, %v650_v10  ;;  %v660_v22 = vsel %vm236_vm2, %v657_v9, 0 }
 0x7c5   :  { %v652_v18 = vpop.f32.mrf.mxu1 }
 0x7c6   :  { %1662 = vmatprep.subr.msk.bf16.mxu0 %vm236_vm2, %v658_v12 }
 0x7c7   :  { %v653_v23 = vpop.f32.mrf.mxu1  ;;  %678 = vmatpush1.bf16.msra.mxu0 %v660_v22 }
 0x7c8   :  { %679 = vmatprep.subr.bf16.mxu0 %v656_v21 }
 0x7cb   :  { %680 = vmatpush1.bf16.msra.mxu0 %v655_v28 }
 0x7ce   :  { %1663 = vmatmul.mubr.msk.bf16.vlgmr.msra.gmra.mxu0 %vm229_vm3, %v2067_v60 }
 0x7cf   :  { %707 = vmatprep.mubr.bf16.mxu0 %v1967_v7 }
 0x7d6   :  { %1664 = vmatmul.mubr.msk.bf16.gmra.mxu0 %vm229_vm3, %v2075_v61 }
 0x7d7   :  { %907 = vmatprep.mubr.bf16.mxu0 %v1967_v7 }
 0x88e   :  { %v699_v25 = vpop.f32.mrf.mxu0 }
 0x88f   :  { %v716_v54 = vadd.f32 %v699_v25, %v2040_v15 }
 0x890   :  { %v701_v26 = vpop.f32.mrf.mxu0 }
 0x891   :  { %v717_v29 = vadd.f32 %v701_v26, %v2002_v0 }
 0x892   :  { %v703_v31 = vpop.f32.mrf.mxu0 }
 0x893   :  { %1766 = vtanh.f32 %v717_v29  ;;  %v718_v43 = vadd.f32 %v703_v31, %v2045_v17 }
 0x894   :  { %v705_v33 = vpop.f32.mrf.mxu0 }
 0x895   :  { %v719_v34 = vadd.f32 %v705_v33, %v2004_v1 }
 0x896   :  { %v709_v35 = vpop.f32.mrf.mxu0 }
 0x897   :  { %1768 = vtanh.f32 %v719_v34  ;;  %v720_v44 = vadd.f32 %v709_v35, %v2042_v16 }
 0x898   :  { %v711_v37 = vpop.f32.mrf.mxu0 }
 0x899   :  { %v721_v27 = vadd.f32 %v711_v37, %v2006_v2 }
 0x89a   :  { %v713_v39 = vpop.f32.mrf.mxu0 }
 0x89b   :  { %1770 = vtanh.f32 %v721_v27 }
 0x89c   :  { %v714_v32 = vpop.f32.mrf.mxu0  ;;  %1772 = vtanh.f32 %v716_v54 }
 0x89d   :  { %1774 = vtanh.f32 %v718_v43 }
 0x89e   :  { %1776 = vtanh.f32 %v720_v44 }
 0x8a0   :  { %v1767_v50 = vpop.eup %1766 }
 0x8a1   :  { %746 = vrot.lane.b32.xlu0 %v1767_v50, %s1959_s15 }
 0x8a4   :  { %v1769_v41 = vpop.eup %1768 }
 0x8a5   :  { %748 = vrot.lane.b32.xlu1 %v1769_v41, %s1959_s15  ;;  %v735_v29 = vmul.f32 0.5, %v1769_v41 }
 0x8a7   :  { %v738_v34 = vadd.f32 0.5, %v735_v29 }
 0x8a8   :  { %v1771_v42 = vpop.eup %1770 }
 0x8a9   :  { %750 = vrot.lane.b32.xlu0 %v1771_v42, %s1959_s15  ;;  %v1773_v45 = vpop.eup %1772  ;;  %v736_v27 = vmul.f32 0.5, %v1771_v42 }
 0x8aa   :  { %v728_v46 = vmul.f32 0.5, %v1773_v45  ;;  %v1775_v56 = vpop.eup %1774 }
 0x8ab   :  { %v729_v48 = vmul.f32 0.5, %v1775_v56  ;;  %v1777_v49 = vpop.eup %1776  ;;  %v739_v54 = vadd.f32 0.5, %v736_v27 }
 0x8ac   :  { %v731_v47 = vadd.f32 0.5, %v728_v46  ;;  %v730_v58 = vmul.f32 0.5, %v1777_v49 }
 0x8ad   :  { %v732_v57 = vadd.f32 0.5, %v729_v48 }
 0x8ae   :  { %v733_v55 = vadd.f32 0.5, %v730_v58  ;;  %v740_v63 = vmul.f32 %v731_v47, %v2159_v36 }
 0x8af   :  { %v741_v12 = vmul.f32 %v732_v57, %v2163_v38  ;;  %v734_v38 = vmul.f32 0.5, %v1767_v50 }
 0x8b0   :  { %v742_v22 = vmul.f32 %v733_v55, %v2167_v40 }
 0x8b1   :  { %v737_v33 = vadd.f32 0.5, %v734_v38 }
 0x913   :  { %v747_v51 = vpop.permute.xlu0 %746 }
 0x914   :  { %v755_v52 = vmul.f32 %v747_v51, %v731_v47 }
 0x916   :  { %761 = vrot.lane.b32.xlu1 %v755_v52, %s1959_s15 }
 0x917   :  { %v749_v53 = vpop.permute.xlu1 %748 }
 0x918   :  { %v756_v30 = vmul.f32 %v749_v53, %v732_v57 }
 0x91a   :  { %763 = vrot.lane.b32.xlu0 %v756_v30, %s1959_s15 }
 0x91b   :  { %v751_v59 = vpop.permute.xlu0 %750 }
 0x91c   :  { %v757_v62 = vmul.f32 %v751_v59, %v733_v55 }
 0x91e   :  { %765 = vrot.lane.b32.xlu1 %v757_v62, %s1959_s15 }
 0x988   :  { %v762_v9 = vpop.permute.xlu1 %761 }
 0x989   :  { %v2209_v10 = vadd.f32 %v762_v9, %v740_v63 }
 0x98b   :  { %1778 = vtanh.f32 %v2209_v10 }
 0x98c   :  { %v764_v18 = vpop.permute.xlu0 %763 }
 0x98d   :  { %v2213_v21 = vadd.f32 %v764_v18, %v741_v12 }
 0x98f   :  { %1780 = vtanh.f32 %v2213_v21 }
 0x990   :  { %v766_v23 = vpop.permute.xlu1 %765 }
 0x991   :  { %v2217_v28 = vadd.f32 %v766_v23, %v742_v22 }
 0x993   :  { %1782 = vtanh.f32 %v2217_v28 }
 0x998   :  { %v1779_v36 = vpop.eup %1778 }
 0x999   :  { %779 = vrot.lane.b32.xlu0 %v1779_v36, %s1959_s15 }
 0x99c   :  { %v1781_v25 = vpop.eup %1780 }
 0x99d   :  { %781 = vrot.lane.b32.xlu1 %v1781_v25, %s1959_s15 }
 0x9a0   :  { %v1783_v26 = vpop.eup %1782 }
 0x9a1   :  { %783 = vrot.lane.b32.xlu0 %v1783_v26, %s1959_s15 }
 0xa0b   :  { %v780_v31 = vpop.permute.xlu0 %779 }
 0xa0c   :  { %v2223_v35 = vmul.f32 %v780_v31, %v737_v33 }
 0xa0f   :  { %v782_v40 = vpop.permute.xlu1 %781 }
 0xa10   :  { %v2225_v37 = vmul.f32 %v782_v40, %v738_v34 }
 0xa12   :  { %v806_v39 = vpack.c.bf16 %v2225_v37, %v2223_v35 }
 0xa13   :  { %v784_v32 = vpop.permute.xlu0 %783 }
 0xa14   :  { %1665 = vmatmul.mubr.msk.bf16.vlgmr.msra.gmra.mxu1 %vm113_vm0, %v806_v39  ;;  %v2232_v50 = vmul.f32 %v784_v32, %v739_v54 }
 0xa15   :  { %856 = vmatprep.mubr.bf16.mxu1 %v1967_v7  ;;  %1021 = vmatpush1.bf16.msra.mxu1 %v2013_v4 }
 0xa16   :  { %1022 = vmatprep.subr.bf16.mxu1 %v2015_v5  ;;  %v807_v41 = vpack.c.bf16 %v2232_v50, %v2232_v50 }
 0xa19   :  { %1023 = vmatpush1.bf16.msra.mxu1 %v2019_v6 }
 0xa1a   :  { %1024 = vmatprep.subr.bf16.mxu1 %v2023_v8 }
 0xa1c   :  { %1666 = vmatmul.mubr.msk.bf16.gmra.mxu1 %vm113_vm0, %v807_v41 }
 0xa1d   :  { %1025 = vmatpush1.bf16.msra.mxu1 %v2028_v11  ;;  %1044 = vmatprep.mubr.bf16.mxu1 %v1967_v7 }
 0xa1e   :  { %1026 = vmatprep.subr.bf16.mxu1 %v2031_v13 }
 0xa21   :  { %1027 = vmatpush1.bf16.msra.mxu1 %v2036_v14 }
 0xa22   :  { %1230 = vmatprep.subr.bf16.mxu1 %v2011_v3 }
 0xad4   :  { %v848_v4 = vpop.f32.mrf.mxu1 }
 0xad6   :  { %v850_v5 = vpop.f32.mrf.mxu1 }
 0xad8   :  { %v852_v6 = vpop.f32.mrf.mxu1 }
 0xad9   :  { %v865_v13 = vpack.c.bf16 %v852_v6, %v848_v4 }
 0xada   :  { %v854_v42 = vpop.f32.mrf.mxu1 }
 0xadb   :  { %v866_v56 = vpack.c.bf16 %v854_v42, %v850_v5 }
 0xadc   :  { %v858_v43 = vpop.f32.mrf.mxu1 }
 0xadd   :  { %v867_v44 = vpack.c.bf16 %v858_v43, %v858_v43 }
 0xade   :  { %v860_v45 = vpop.f32.mrf.mxu1 }
 0xadf   :  { %v868_v8 = vpack.c.bf16 %v860_v45, %v860_v45  ;;  %v870_v11 = vsel %vm236_vm2, %v867_v44, 0 }
 0xae0   :  { %v862_v46 = vpop.f32.mrf.mxu1 }
 0xae1   :  { %1667 = vmatprep.subr.msk.bf16.mxu0 %vm236_vm2, %v868_v8 }
 0xae2   :  { %v863_v47 = vpop.f32.mrf.mxu1  ;;  %888 = vmatpush1.bf16.msra.mxu0 %v870_v11 }
 0xae3   :  { %889 = vmatprep.subr.bf16.mxu0 %v866_v56 }
 0xae6   :  { %890 = vmatpush1.bf16.msra.mxu0 %v865_v13 }
 0xae9   :  { %1668 = vmatmul.mubr.msk.bf16.vlgmr.msra.gmra.mxu0 %vm229_vm3, %v2067_v60 }
 0xaea   :  { %917 = vmatprep.mubr.bf16.mxu0 %v1967_v7 }
 0xaf1   :  { %1669 = vmatmul.mubr.msk.bf16.gmra.mxu0 %vm229_vm3, %v2075_v61 }
 0xaf2   :  { %1105 = vmatprep.mubr.bf16.mxu0 %v1967_v7 }
 0xba9   :  { %v909_v3 = vpop.f32.mrf.mxu0 }
 0xbaa   :  { %v926_v9 = vadd.f32 %v909_v3, %v2040_v15 }
 0xbab   :  { %v911_v48 = vpop.f32.mrf.mxu0 }
 0xbac   :  { %v927_v49 = vadd.f32 %v911_v48, %v2002_v0 }
 0xbad   :  { %v913_v51 = vpop.f32.mrf.mxu0 }
 0xbae   :  { %1784 = vtanh.f32 %v927_v49 }
 0xbaf   :  { %v915_v52 = vpop.f32.mrf.mxu0 }
 0xbb0   :  { %v929_v57 = vadd.f32 %v915_v52, %v2004_v1  ;;  %v928_v1 = vadd.f32 %v913_v51, %v2045_v17  ;;  %v2284_v51 = vld [vmem:[#allocation7 + $0x30] ss:$8 sps:$4 sm:$0xff]   ;;  %v2288_v52 = vld [vmem:[#allocation7 + $0x24] ss:$8 sps:$4 sm:$0xff]  }
 0xbb1   :  { %v919_v58 = vpop.f32.mrf.mxu0 }
 0xbb2   :  { %1786 = vtanh.f32 %v929_v57  ;;  %v2291_v57 = vld [vmem:[#allocation7 + $0x20] ss:$8 sps:$4 sm:$0xff]  }
 0xbb3   :  { %v921_v53 = vpop.f32.mrf.mxu0 }
 0xbb4   :  { %v931_v30 = vadd.f32 %v921_v53, %v2006_v2  ;;  %v930_v2 = vadd.f32 %v919_v58, %v2042_v16  ;;  %v2294_v53 = vld [vmem:[#allocation7 + $0x14] ss:$8 sps:$4 sm:$0xff]  }
 0xbb5   :  { %v923_v55 = vpop.f32.mrf.mxu0 }
 0xbb6   :  { %1788 = vtanh.f32 %v931_v30  ;;  %v2298_v30 = vld [vmem:[#allocation7 + $0x10] ss:$8 sps:$4 sm:$0xff]   ;;  %v2302_v55 = vld [vmem:[#allocation7 + $0x4] ss:$8 sps:$4 sm:$0xff]  }
 0xbb7   :  { %v924_v59 = vpop.f32.mrf.mxu0  ;;  %1790 = vtanh.f32 %v926_v9 }
 0xbb8   :  { %1792 = vtanh.f32 %v928_v1  ;;  %v1862_v59 = vld [vmem:[#allocation7 + $0x34] ss:$8 sps:$4 sm:$0xff]  }
 0xbb9   :  { %1794 = vtanh.f32 %v930_v2 }
 0xbbb   :  { %v1785_v62 = vpop.eup %1784 }
 0xbbc   :  { %956 = vrot.lane.b32.xlu1 %v1785_v62, %s1959_s15 }
 0xbbf   :  { %v1787_v63 = vpop.eup %1786 }
 0xbc0   :  { %958 = vrot.lane.b32.xlu0 %v1787_v63, %s1959_s15  ;;  %v945_v45 = vmul.f32 0.5, %v1787_v63 }
 0xbc3   :  { %v1789_v0 = vpop.eup %1788 }
 0xbc4   :  { %960 = vrot.lane.b32.xlu1 %v1789_v0, %s1959_s15  ;;  %v1791_v12 = vpop.eup %1790  ;;  %v946_v56 = vmul.f32 0.5, %v1789_v0 }
 0xbc5   :  { %v938_v18 = vmul.f32 0.5, %v1791_v12  ;;  %v1793_v22 = vpop.eup %1792 }
 0xbc6   :  { %v939_v36 = vmul.f32 0.5, %v1793_v22  ;;  %v1795_v25 = vpop.eup %1794  ;;  %v949_v3 = vadd.f32 0.5, %v946_v56 }
 0xbc7   :  { %v941_v23 = vadd.f32 0.5, %v938_v18  ;;  %v940_v31 = vmul.f32 0.5, %v1795_v25 }
 0xbc8   :  { %v942_v29 = vadd.f32 0.5, %v939_v36 }
 0xbc9   :  { %v943_v17 = vadd.f32 0.5, %v940_v31  ;;  %v950_v40 = vmul.f32 %v941_v23, %v2209_v10 }
 0xbca   :  { %v951_v32 = vmul.f32 %v942_v29, %v2213_v21  ;;  %v944_v21 = vmul.f32 0.5, %v1785_v62 }
 0xbcb   :  { %v952_v4 = vmul.f32 %v943_v17, %v2217_v28  ;;  %v948_v28 = vadd.f32 0.5, %v945_v45 }
 0xbcc   :  { %v947_v44 = vadd.f32 0.5, %v944_v21 }
 0xc2e   :  { %v957_v26 = vpop.permute.xlu1 %956 }
 0xc2f   :  { %v965_v38 = vmul.f32 %v957_v26, %v941_v23 }
 0xc31   :  { %971 = vrot.lane.b32.xlu0 %v965_v38, %s1959_s15 }
 0xc32   :  { %v959_v15 = vpop.permute.xlu0 %958 }
 0xc33   :  { %v966_v33 = vmul.f32 %v959_v15, %v942_v29  ;;  %v2314_v29 = vld [vmem:[#allocation2 + $0x8] sm:$0xff] }
 0xc35   :  { %973 = vrot.lane.b32.xlu1 %v966_v33, %s1959_s15 }
 0xc36   :  { %v961_v34 = vpop.permute.xlu1 %960 }
 0xc37   :  { %v967_v16 = vmul.f32 %v961_v34, %v943_v17  ;;  %v2317_v17 = vld [vmem:[#allocation2 + $0x18] sm:$0xff] }
 0xc39   :  { %975 = vrot.lane.b32.xlu0 %v967_v16, %s1959_s15 }
 0xca3   :  { %v972_v27 = vpop.permute.xlu0 %971 }
 0xca4   :  { %v2266_v39 = vadd.f32 %v972_v27, %v950_v40  ;;  %v2320_v40 = vld [vmem:[#allocation2 + $0x28] sm:$0x3f] }
 0xca6   :  { %1796 = vtanh.f32 %v2266_v39 }
 0xca7   :  { %v974_v54 = vpop.permute.xlu1 %973 }
 0xca8   :  { %v2270_v41 = vadd.f32 %v974_v54, %v951_v32 }
 0xcaa   :  { %1798 = vtanh.f32 %v2270_v41 }
 0xcab   :  { %v976_v5 = vpop.permute.xlu0 %975 }
 0xcac   :  { %v2274_v6 = vadd.f32 %v976_v5, %v952_v4 }
 0xcae   :  { %1800 = vtanh.f32 %v2274_v6 }
 0xcb3   :  { %v1797_v10 = vpop.eup %1796 }
 0xcb4   :  { %989 = vrot.lane.b32.xlu1 %v1797_v10, %s1959_s15  ;;  %v2326_v10 = vld [vmem:[#allocation2] sm:$0xff] }
 0xcb7   :  { %v1799_v42 = vpop.eup %1798 }
 0xcb8   :  { %991 = vrot.lane.b32.xlu0 %v1799_v42, %s1959_s15 }
 0xcbb   :  { %v1801_v43 = vpop.eup %1800 }
 0xcbc   :  { %993 = vrot.lane.b32.xlu1 %v1801_v43, %s1959_s15  ;;  %v2329_v43 = vld [vmem:[#allocation2 + $0x10] sm:$0xff] }
 0xd26   :  { %v990_v8 = vpop.permute.xlu1 %989 }
 0xd27   :  { %v998_v46 = vmul.f32 %v990_v8, %v947_v44  ;;  %v2332_v44 = vld [vmem:[#allocation2 + $0x20] sm:$0x3f] }
 0xd29   :  { %1001 = vst.msk [vmem:[#allocation8 + $0x10] sm:$0xff] %vm113_vm0, %v998_v46 }
 0xd2a   :  { %v992_v11 = vpop.permute.xlu0 %991 }
 0xd2b   :  { %v999_v47 = vmul.f32 %v992_v11, %v948_v28 }
 0xd2d   :  { %1002 = vst.msk [vmem:[#allocation8 + $0x30] sm:$0xff] %vm113_vm0, %v999_v47  ;;  %v1004_v13 = vpack.c.bf16 %v999_v47, %v998_v46 }
 0xd2e   :  { %v994_v48 = vpop.permute.xlu1 %993 }
 0xd2f   :  { %v1000_v49 = vmul.f32 %v994_v48, %v949_v3  ;;  %1670 = vmatmul.mubr.msk.bf16.vlgmr.msra.gmra.mxu1 %vm113_vm0, %v1004_v13 }
 0xd30   :  { %1054 = vmatprep.mubr.bf16.mxu1 %v1967_v7  ;;  %1231 = vmatpush1.bf16.msra.mxu1 %v2284_v51 }
 0xd31   :  { %1003 = vst.msk [vmem:[#allocation8 + $0x50] sm:$0x3f] %vm116_vm1, %v1000_v49  ;;  %1232 = vmatprep.subr.bf16.mxu1 %v2288_v52  ;;  %v1005_v58 = vpack.c.bf16 %v1000_v49, %v1000_v49 }
 0xd34   :  { %1233 = vmatpush1.bf16.msra.mxu1 %v2291_v57 }
 0xd35   :  { %1234 = vmatprep.subr.bf16.mxu1 %v2294_v53 }
 0xd37   :  { %1671 = vmatmul.mubr.msk.bf16.gmra.mxu1 %vm113_vm0, %v1005_v58 }
 0xd38   :  { %1235 = vmatpush1.bf16.msra.mxu1 %v2298_v30  ;;  %1254 = vmatprep.mubr.bf16.mxu1 %v1967_v7 }
 0xd39   :  { %1236 = vmatprep.subr.bf16.mxu1 %v2302_v55 }
 0xd3c   :  { %1237 = vmatpush1.bf16.msra.mxu1 %v2036_v14 }
 0xd3d   :  { %1428 = vmatprep.subr.bf16.mxu1 %v1862_v59 }
 0xdef   :  { %v1046_v62 = vpop.f32.mrf.mxu1 }
 0xdf1   :  { %v1048_v63 = vpop.f32.mrf.mxu1 }
 0xdf3   :  { %v1050_v0 = vpop.f32.mrf.mxu1 }
 0xdf4   :  { %v1063_v14 = vpack.c.bf16 %v1050_v0, %v1046_v62 }
 0xdf5   :  { %v1052_v9 = vpop.f32.mrf.mxu1 }
 0xdf6   :  { %v1064_v23 = vpack.c.bf16 %v1052_v9, %v1048_v63 }
 0xdf7   :  { %v1056_v1 = vpop.f32.mrf.mxu1 }
 0xdf8   :  { %v1065_v2 = vpack.c.bf16 %v1056_v1, %v1056_v1 }
 0xdf9   :  { %v1058_v12 = vpop.f32.mrf.mxu1 }
 0xdfa   :  { %v1066_v18 = vpack.c.bf16 %v1058_v12, %v1058_v12  ;;  %v1068_v36 = vsel %vm236_vm2, %v1065_v2, 0 }
 0xdfb   :  { %v1060_v22 = vpop.f32.mrf.mxu1 }
 0xdfc   :  { %1672 = vmatprep.subr.msk.bf16.mxu0 %vm236_vm2, %v1066_v18 }
 0xdfd   :  { %v1061_v25 = vpop.f32.mrf.mxu1  ;;  %1086 = vmatpush1.bf16.msra.mxu0 %v1068_v36 }
 0xdfe   :  { %1087 = vmatprep.subr.bf16.mxu0 %v1064_v23 }
 0xe01   :  { %1088 = vmatpush1.bf16.msra.mxu0 %v1063_v14 }
 0xe04   :  { %1673 = vmatmul.mubr.msk.bf16.vlgmr.msra.gmra.mxu0 %vm229_vm3, %v2067_v60 }
 0xe05   :  { %1115 = vmatprep.mubr.bf16.mxu0 %v1967_v7 }
 0xe0c   :  { %1674 = vmatmul.mubr.msk.bf16.gmra.mxu0 %vm229_vm3, %v2075_v61 }
 0xe0d   :  { %1315 = vmatprep.mubr.bf16.mxu0 %v1967_v7 }
 0xec4   :  { %v1107_v26 = vpop.f32.mrf.mxu0 }
 0xec5   :  { %v1124_v42 = vadd.f32 %v2326_v10, %v1107_v26 }
 0xec6   :  { %v1109_v38 = vpop.f32.mrf.mxu0 }
 0xec7   :  { %v1125_v31 = vadd.f32 %v2314_v29, %v1109_v38 }
 0xec8   :  { %v1111_v15 = vpop.f32.mrf.mxu0 }
 0xec9   :  { %1802 = vtanh.f32 %v1125_v31  ;;  %v1126_v21 = vadd.f32 %v2329_v43, %v1111_v15 }
 0xeca   :  { %v1113_v33 = vpop.f32.mrf.mxu0 }
 0xecb   :  { %v1127_v60 = vadd.f32 %v2317_v17, %v1113_v33 }
 0xecc   :  { %v1117_v34 = vpop.f32.mrf.mxu0 }
 0xecd   :  { %1804 = vtanh.f32 %v1127_v60  ;;  %v1128_v45 = vadd.f32 %v2332_v44, %v1117_v34 }
 0xece   :  { %v1119_v16 = vpop.f32.mrf.mxu0 }
 0xecf   :  { %v1129_v61 = vadd.f32 %v2320_v40, %v1119_v16 }
 0xed0   :  { %v1121_v27 = vpop.f32.mrf.mxu0 }
 0xed1   :  { %1806 = vtanh.f32 %v1129_v61 }
 0xed2   :  { %v1122_v32 = vpop.f32.mrf.mxu0  ;;  %1808 = vtanh.f32 %v1124_v42 }
 0xed3   :  { %1810 = vtanh.f32 %v1126_v21 }
 0xed4   :  { %1812 = vtanh.f32 %v1128_v45 }
 0xed6   :  { %v1803_v54 = vpop.eup %1802 }
 0xed7   :  { %1154 = vrot.lane.b32.xlu0 %v1803_v54, %s1959_s15 }
 0xeda   :  { %v1805_v4 = vpop.eup %1804 }
 0xedb   :  { %1156 = vrot.lane.b32.xlu1 %v1805_v4, %s1959_s15  ;;  %v1143_v38 = vmul.f32 0.5, %v1805_v4 }
 0xedd   :  { %v1146_v33 = vadd.f32 0.5, %v1143_v38 }
 0xede   :  { %v1807_v5 = vpop.eup %1806 }
 0xedf   :  { %1158 = vrot.lane.b32.xlu0 %v1807_v5, %s1959_s15  ;;  %v1809_v8 = vpop.eup %1808  ;;  %v1144_v16 = vmul.f32 0.5, %v1807_v5 }
 0xee0   :  { %v1136_v46 = vmul.f32 0.5, %v1809_v8  ;;  %v1811_v28 = vpop.eup %1810 }
 0xee1   :  { %v1137_v11 = vmul.f32 0.5, %v1811_v28  ;;  %v1813_v47 = vpop.eup %1812  ;;  %v1147_v32 = vadd.f32 0.5, %v1144_v16 }
 0xee2   :  { %v1139_v56 = vadd.f32 0.5, %v1136_v46  ;;  %v1138_v49 = vmul.f32 0.5, %v1813_v47  ;;  %v2380_v47 = vld [vmem:[#allocation5 + $0x8] ss:$0 sps:$4 sm:$0x77]  }
 0xee3   :  { %v1140_v48 = vadd.f32 0.5, %v1137_v11  ;;  %v2375_v11 = vld [vmem:[#allocation5] sm:$0xff]  }
 0xee4   :  { %v1141_v62 = vadd.f32 0.5, %v1138_v49  ;;  %v1148_v9 = vmul.f32 %v1139_v56, %v2266_v39 }
 0xee5   :  { %v1149_v12 = vmul.f32 %v1140_v48, %v2270_v41  ;;  %v1142_v41 = vmul.f32 0.5, %v1803_v54 }
 0xee6   :  { %v1150_v23 = vmul.f32 %v1141_v62, %v2274_v6 }
 0xee7   :  { %v1145_v15 = vadd.f32 0.5, %v1142_v41 }
 0xf49   :  { %v1155_v13 = vpop.permute.xlu0 %1154 }
 0xf4a   :  { %v1163_v3 = vmul.f32 %v1155_v13, %v1139_v56 }
 0xf4c   :  { %1169 = vrot.lane.b32.xlu1 %v1163_v3, %s1959_s15 }
 0xf4d   :  { %v1157_v58 = vpop.permute.xlu1 %1156 }
 0xf4e   :  { %v1164_v59 = vmul.f32 %v1157_v58, %v1140_v48 }
 0xf50   :  { %1171 = vrot.lane.b32.xlu0 %v1164_v59, %s1959_s15 }
 0xf51   :  { %v1159_v63 = vpop.permute.xlu0 %1158 }
 0xf52   :  { %v1165_v0 = vmul.f32 %v1159_v63, %v1141_v62 }
 0xf54   :  { %1173 = vrot.lane.b32.xlu1 %v1165_v0, %s1959_s15 }
 0xfbe   :  { %v1170_v1 = vpop.permute.xlu1 %1169 }
 0xfbf   :  { %v2339_v2 = vadd.f32 %v1170_v1, %v1148_v9 }
 0xfc1   :  { %1814 = vtanh.f32 %v2339_v2 }
 0xfc2   :  { %v1172_v18 = vpop.permute.xlu0 %1171 }
 0xfc3   :  { %v2343_v22 = vadd.f32 %v1172_v18, %v1149_v12 }
 0xfc5   :  { %1816 = vtanh.f32 %v2343_v22 }
 0xfc6   :  { %v1174_v36 = vpop.permute.xlu1 %1173 }
 0xfc7   :  { %v2347_v25 = vadd.f32 %v1174_v36, %v1150_v23 }
 0xfc9   :  { %1818 = vtanh.f32 %v2347_v25 }
 0xfce   :  { %v1815_v39 = vpop.eup %1814 }
 0xfcf   :  { %1187 = vrot.lane.b32.xlu0 %v1815_v39, %s1959_s15 }
 0xfd2   :  { %v1817_v14 = vpop.eup %1816 }
 0xfd3   :  { %1189 = vrot.lane.b32.xlu1 %v1817_v14, %s1959_s15 }
 0xfd6   :  { %v1819_v26 = vpop.eup %1818 }
 0xfd7   :  { %1191 = vrot.lane.b32.xlu0 %v1819_v26, %s1959_s15 }
0x1041   :  { %v1188_v31 = vpop.permute.xlu0 %1187 }
0x1042   :  { %v2353_v60 = vmul.f32 %v1188_v31, %v1145_v15 }
0x1045   :  { %v1190_v6 = vpop.permute.xlu1 %1189 }
0x1046   :  { %v2355_v34 = vmul.f32 %v1190_v6, %v1146_v33 }
0x1048   :  { %v1214_v61 = vpack.c.bf16 %v2355_v34, %v2353_v60 }
0x1049   :  { %v1192_v27 = vpop.permute.xlu0 %1191 }
0x104a   :  { %1675 = vmatmul.mubr.msk.bf16.vlgmr.msra.gmra.mxu1 %vm113_vm0, %v1214_v61  ;;  %v2362_v54 = vmul.f32 %v1192_v27, %v1147_v32 }
0x104b   :  { %1264 = vmatprep.mubr.bf16.mxu1 %v1967_v7  ;;  %1429 = vmatpush1.bf16.msra.mxu1 %v2284_v51  ;;  %v1869_v51 = vld [vmem:[#allocation7] ss:$8 sps:$4 sm:$0xff]  }
0x104c   :  { %1430 = vmatprep.subr.bf16.mxu1 %v2288_v52  ;;  %v1215_v4 = vpack.c.bf16 %v2362_v54, %v2362_v54 }
0x104f   :  { %1431 = vmatpush1.bf16.msra.mxu1 %v2291_v57 }
0x1050   :  { %1432 = vmatprep.subr.bf16.mxu1 %v2294_v53 }
0x1052   :  { %1676 = vmatmul.mubr.msk.bf16.gmra.mxu1 %vm113_vm0, %v1215_v4 }
0x1053   :  { %1433 = vmatpush1.bf16.msra.mxu1 %v2298_v30  ;;  %1452 = vmatprep.mubr.bf16.mxu1 %v1967_v7 }
0x1054   :  { %1434 = vmatprep.subr.bf16.mxu1 %v2302_v55 }
0x1057   :  { %1435 = vmatpush1.bf16.msra.mxu1 %v1869_v51 }
0x110a   :  { %v1256_v5 = vpop.f32.mrf.mxu1 }
0x110c   :  { %v1258_v42 = vpop.f32.mrf.mxu1 }
0x110e   :  { %v1260_v52 = vpop.f32.mrf.mxu1 }
0x110f   :  { %v1273_v55 = vpack.c.bf16 %v1260_v52, %v1256_v5 }
0x1110   :  { %v1262_v21 = vpop.f32.mrf.mxu1 }
0x1111   :  { %v1274_v53 = vpack.c.bf16 %v1262_v21, %v1258_v42 }
0x1112   :  { %v1266_v57 = vpop.f32.mrf.mxu1 }
0x1113   :  { %v1275_v45 = vpack.c.bf16 %v1266_v57, %v1266_v57 }
0x1114   :  { %v1268_v8 = vpop.f32.mrf.mxu1 }
0x1115   :  { %v1276_v46 = vpack.c.bf16 %v1268_v8, %v1268_v8  ;;  %v1278_v56 = vsel %vm236_vm2, %v1275_v45, 0 }
0x1116   :  { %v1270_v28 = vpop.f32.mrf.mxu1 }
0x1117   :  { %1677 = vmatprep.subr.msk.bf16.mxu0 %vm236_vm2, %v1276_v46 }
0x1118   :  { %v1271_v30 = vpop.f32.mrf.mxu1  ;;  %1296 = vmatpush1.bf16.msra.mxu0 %v1278_v56 }
0x1119   :  { %1297 = vmatprep.subr.bf16.mxu0 %v1274_v53 }
0x111c   :  { %1298 = vmatpush1.bf16.msra.mxu0 %v1273_v55 }
0x111f   :  { %1678 = vmatmul.mubr.msk.bf16.vlgmr.msra.gmra.mxu0 %vm229_vm3, %v2375_v11 }
0x1120   :  { %1325 = vmatprep.mubr.bf16.mxu0 %v1967_v7 }
0x1127   :  { %1679 = vmatmul.mubr.msk.bf16.gmra.mxu0 %vm229_vm3, %v2380_v47 }
0x1128   :  { %1513 = vmatprep.mubr.bf16.mxu0 %v1967_v7 }
0x11df   :  { %v1317_v13 = vpop.f32.mrf.mxu0 }
0x11e0   :  { %v1334_v36 = vadd.f32 %v2326_v10, %v1317_v13 }
0x11e1   :  { %v1319_v3 = vpop.f32.mrf.mxu0 }
0x11e2   :  { %v1335_v48 = vadd.f32 %v2314_v29, %v1319_v3 }
0x11e3   :  { %v1321_v49 = vpop.f32.mrf.mxu0 }
0x11e4   :  { %1820 = vtanh.f32 %v1335_v48  ;;  %v1336_v39 = vadd.f32 %v2329_v43, %v1321_v49 }
0x11e5   :  { %v1323_v58 = vpop.f32.mrf.mxu0 }
0x11e6   :  { %v1337_v59 = vadd.f32 %v2317_v17, %v1323_v58 }
0x11e7   :  { %v1327_v62 = vpop.f32.mrf.mxu0 }
0x11e8   :  { %1822 = vtanh.f32 %v1337_v59  ;;  %v1338_v14 = vadd.f32 %v2332_v44, %v1327_v62 }
0x11e9   :  { %v1329_v63 = vpop.f32.mrf.mxu0 }
0x11ea   :  { %v1339_v0 = vadd.f32 %v2320_v40, %v1329_v63 }
0x11eb   :  { %v1331_v9 = vpop.f32.mrf.mxu0 }
0x11ec   :  { %1824 = vtanh.f32 %v1339_v0 }
0x11ed   :  { %v1332_v1 = vpop.f32.mrf.mxu0  ;;  %1826 = vtanh.f32 %v1334_v36 }
0x11ee   :  { %1828 = vtanh.f32 %v1336_v39 }
0x11ef   :  { %1830 = vtanh.f32 %v1338_v14 }
0x11f1   :  { %v1821_v12 = vpop.eup %1820 }
0x11f2   :  { %1364 = vrot.lane.b32.xlu1 %v1821_v12, %s1959_s15 }
0x11f5   :  { %v1823_v18 = vpop.eup %1822 }
0x11f6   :  { %1366 = vrot.lane.b32.xlu0 %v1823_v18, %s1959_s15  ;;  %v1353_v3 = vmul.f32 0.5, %v1823_v18 }
0x11f9   :  { %v1825_v23 = vpop.eup %1824 }
0x11fa   :  { %1368 = vrot.lane.b32.xlu1 %v1825_v23, %s1959_s15  ;;  %v1827_v26 = vpop.eup %1826  ;;  %v1354_v58 = vmul.f32 0.5, %v1825_v23 }
0x11fb   :  { %v1346_v41 = vmul.f32 0.5, %v1827_v26  ;;  %v1829_v38 = vpop.eup %1828 }
0x11fc   :  { %v1347_v15 = vmul.f32 0.5, %v1829_v38  ;;  %v1831_v33 = vpop.eup %1830  ;;  %v1357_v0 = vadd.f32 0.5, %v1354_v58 }
0x11fd   :  { %v1349_v31 = vadd.f32 0.5, %v1346_v41  ;;  %v1348_v27 = vmul.f32 0.5, %v1831_v33 }
0x11fe   :  { %v1350_v61 = vadd.f32 0.5, %v1347_v15 }
0x11ff   :  { %v1351_v51 = vadd.f32 0.5, %v1348_v27  ;;  %v1358_v52 = vmul.f32 %v1349_v31, %v2339_v2 }
0x1200   :  { %v1359_v45 = vmul.f32 %v1350_v61, %v2343_v22  ;;  %v1352_v22 = vmul.f32 0.5, %v1821_v12 }
0x1201   :  { %v1360_v28 = vmul.f32 %v1351_v51, %v2347_v25  ;;  %v1356_v25 = vadd.f32 0.5, %v1353_v3 }
0x1202   :  { %v1355_v13 = vadd.f32 0.5, %v1352_v22 }
0x1264   :  { %v1365_v6 = vpop.permute.xlu1 %1364 }
0x1265   :  { %v1373_v16 = vmul.f32 %v1365_v6, %v1349_v31 }
0x1267   :  { %1379 = vrot.lane.b32.xlu0 %v1373_v16, %s1959_s15 }
0x1268   :  { %v1367_v32 = vpop.permute.xlu0 %1366 }
0x1269   :  { %v1374_v4 = vmul.f32 %v1367_v32, %v1350_v61 }
0x126b   :  { %1381 = vrot.lane.b32.xlu1 %v1374_v4, %s1959_s15 }
0x126c   :  { %v1369_v5 = vpop.permute.xlu1 %1368 }
0x126d   :  { %v1375_v42 = vmul.f32 %v1369_v5, %v1351_v51 }
0x126f   :  { %1383 = vrot.lane.b32.xlu0 %v1375_v42, %s1959_s15 }
0x12d9   :  { %v1380_v21 = vpop.permute.xlu0 %1379 }
0x12da   :  { %v2398_v57 = vadd.f32 %v1380_v21, %v1358_v52 }
0x12dc   :  { %1832 = vtanh.f32 %v2398_v57 }
0x12dd   :  { %v1382_v8 = vpop.permute.xlu1 %1381 }
0x12de   :  { %v2402_v46 = vadd.f32 %v1382_v8, %v1359_v45 }
0x12e0   :  { %1834 = vtanh.f32 %v2402_v46 }
0x12e1   :  { %v1384_v53 = vpop.permute.xlu0 %1383 }
0x12e2   :  { %v2406_v56 = vadd.f32 %v1384_v53, %v1360_v28 }
0x12e4   :  { %1836 = vtanh.f32 %v2406_v56 }
0x12e9   :  { %v1833_v2 = vpop.eup %1832 }
0x12ea   :  { %1397 = vrot.lane.b32.xlu1 %v1833_v2, %s1959_s15 }
0x12ed   :  { %v1835_v30 = vpop.eup %1834 }
0x12ee   :  { %1399 = vrot.lane.b32.xlu0 %v1835_v30, %s1959_s15 }
0x12f1   :  { %v1837_v55 = vpop.eup %1836 }
0x12f2   :  { %1401 = vrot.lane.b32.xlu1 %v1837_v55, %s1959_s15 }
0x135c   :  { %v1398_v48 = vpop.permute.xlu1 %1397 }
0x135d   :  { %v1406_v49 = vmul.f32 %v1398_v48, %v1355_v13 }
0x135f   :  { %1409 = vst.msk [vmem:[#allocation8 + $0x18] sm:$0xff] %vm113_vm0, %v1406_v49 }
0x1360   :  { %v1400_v59 = vpop.permute.xlu0 %1399 }
0x1361   :  { %v1407_v62 = vmul.f32 %v1400_v59, %v1356_v25 }
0x1363   :  { %1410 = vst.msk [vmem:[#allocation8 + $0x38] sm:$0xff] %vm113_vm0, %v1407_v62  ;;  %v1412_v63 = vpack.c.bf16 %v1407_v62, %v1406_v49 }
0x1364   :  { %v1402_v9 = vpop.permute.xlu1 %1401 }
0x1365   :  { %v1408_v1 = vmul.f32 %v1402_v9, %v1357_v0  ;;  %1680 = vmatmul.mubr.msk.bf16.vlgmr.msra.gmra.mxu1 %vm113_vm0, %v1412_v63 }
0x1366   :  { %1462 = vmatprep.mubr.bf16.mxu1 %v1967_v7 }
0x1367   :  { %1411 = vst.msk [vmem:[#allocation8 + $0x58] sm:$0x3f] %vm116_vm1, %v1408_v1  ;;  %v1413_v12 = vpack.c.bf16 %v1408_v1, %v1408_v1 }
0x136d   :  { %1681 = vmatmul.mubr.msk.bf16.gmra.mxu1 %vm113_vm0, %v1413_v12 }
0x1425   :  { %v1454_v18 = vpop.f32.mrf.mxu1 }
0x1427   :  { %v1456_v36 = vpop.f32.mrf.mxu1 }
0x1429   :  { %v1458_v23 = vpop.f32.mrf.mxu1 }
0x142a   :  { %v1471_v16 = vpack.c.bf16 %v1458_v23, %v1454_v18 }
0x142b   :  { %v1460_v39 = vpop.f32.mrf.mxu1 }
0x142c   :  { %v1472_v15 = vpack.c.bf16 %v1460_v39, %v1456_v36 }
0x142d   :  { %v1464_v14 = vpop.f32.mrf.mxu1 }
0x142e   :  { %v1473_v26 = vpack.c.bf16 %v1464_v14, %v1464_v14 }
0x142f   :  { %v1466_v41 = vpop.f32.mrf.mxu1 }
0x1430   :  { %v1474_v38 = vpack.c.bf16 %v1466_v41, %v1466_v41  ;;  %v1476_v33 = vsel %vm236_vm2, %v1473_v26, 0 }
0x1431   :  { %v1468_v31 = vpop.f32.mrf.mxu1 }
0x1432   :  { %1682 = vmatprep.subr.msk.bf16.mxu0 %vm236_vm2, %v1474_v38 }
0x1433   :  { %v1469_v6 = vpop.f32.mrf.mxu1  ;;  %1494 = vmatpush1.bf16.msra.mxu0 %v1476_v33 }
0x1434   :  { %1495 = vmatprep.subr.bf16.mxu0 %v1472_v15 }
0x1437   :  { %1496 = vmatpush1.bf16.msra.mxu0 %v1471_v16 }
0x143a   :  { %1683 = vmatmul.mubr.msk.bf16.vlgmr.msra.gmra.mxu0 %vm229_vm3, %v2375_v11 }
0x143b   :  { %1523 = vmatprep.mubr.bf16.mxu0 %v1967_v7 }
0x1442   :  { %1684 = vmatmul.mubr.msk.bf16.gmra.mxu0 %vm229_vm3, %v2380_v47 }
0x14fa   :  { %v1515_v61 = vpop.f32.mrf.mxu0 }
0x14fb   :  { %v1532_v8 = vadd.f32 %v2326_v10, %v1515_v61 }
0x14fc   :  { %v1517_v27 = vpop.f32.mrf.mxu0 }
0x14fd   :  { %v1533_v32 = vadd.f32 %v2314_v29, %v1517_v27 }
0x14fe   :  { %v1519_v4 = vpop.f32.mrf.mxu0 }
0x14ff   :  { %1838 = vtanh.f32 %v1533_v32 }
0x1500   :  { %v1521_v51 = vpop.f32.mrf.mxu0 }
0x1501   :  { %v1535_v5 = vadd.f32 %v2317_v17, %v1521_v51  ;;  %v1534_v17 = vadd.f32 %v2329_v43, %v1519_v4 }
0x1502   :  { %v1525_v42 = vpop.f32.mrf.mxu0 }
0x1503   :  { %1840 = vtanh.f32 %v1535_v5 }
0x1504   :  { %v1527_v52 = vpop.f32.mrf.mxu0 }
0x1505   :  { %v1537_v21 = vadd.f32 %v2320_v40, %v1527_v52  ;;  %v1536_v40 = vadd.f32 %v2332_v44, %v1525_v42 }
0x1506   :  { %v1529_v11 = vpop.f32.mrf.mxu0 }
0x1507   :  { %1842 = vtanh.f32 %v1537_v21 }
0x1508   :  { %v1530_v7 = vpop.f32.mrf.mxu0  ;;  %1844 = vtanh.f32 %v1532_v8 }
0x1509   :  { %1846 = vtanh.f32 %v1534_v17 }
0x150a   :  { %1848 = vtanh.f32 %v1536_v40 }
0x150c   :  { %v1839_v45 = vpop.eup %1838 }
0x150d   :  { %1562 = vrot.lane.b32.xlu0 %v1839_v45, %s1959_s15 }
0x1510   :  { %v1841_v47 = vpop.eup %1840 }
0x1511   :  { %1564 = vrot.lane.b32.xlu1 %v1841_v47, %s1959_s15 }
0x1514   :  { %v1843_v29 = vpop.eup %1842 }
0x1515   :  { %1566 = vrot.lane.b32.xlu0 %v1843_v29, %s1959_s15  ;;  %v1845_v28 = vpop.eup %1844 }
0x1516   :  { %v1544_v53 = vmul.f32 0.5, %v1845_v28  ;;  %v1847_v2 = vpop.eup %1846 }
0x1517   :  { %v1545_v55 = vmul.f32 0.5, %v1847_v2  ;;  %v1849_v22 = vpop.eup %1848 }
0x1518   :  { %v1547_v30 = vadd.f32 0.5, %v1544_v53  ;;  %v1546_v49 = vmul.f32 0.5, %v1849_v22 }
0x1519   :  { %v1548_v48 = vadd.f32 0.5, %v1545_v55 }
0x151a   :  { %v1549_v43 = vadd.f32 0.5, %v1546_v49  ;;  %v1556_v59 = vmul.f32 %v1547_v30, %v2398_v57 }
0x151b   :  { %v1557_v0 = vmul.f32 %v1548_v48, %v2402_v46 }
0x151c   :  { %v1558_v12 = vmul.f32 %v1549_v43, %v2406_v56  ;;  %v1552_v56 = vmul.f32 0.5, %v1843_v29 }
0x157f   :  { %v1563_v13 = vpop.permute.xlu0 %1562 }
0x1580   :  { %v1571_v3 = vmul.f32 %v1563_v13, %v1547_v30 }
0x1582   :  { %1577 = vrot.lane.b32.xlu1 %v1571_v3, %s1959_s15 }
0x1583   :  { %v1565_v10 = vpop.permute.xlu1 %1564 }
0x1584   :  { %v1572_v25 = vmul.f32 %v1565_v10, %v1548_v48 }
0x1586   :  { %1579 = vrot.lane.b32.xlu0 %v1572_v25, %s1959_s15 }
0x1587   :  { %v1567_v58 = vpop.permute.xlu0 %1566 }
0x1588   :  { %v1573_v44 = vmul.f32 %v1567_v58, %v1549_v43 }
0x158a   :  { %1581 = vrot.lane.b32.xlu1 %v1573_v44, %s1959_s15 }
0x15f4   :  { %v1578_v62 = vpop.permute.xlu1 %1577 }
0x15f5   :  { %v1586_v63 = vadd.f32 %v1578_v62, %v1556_v59 }
0x15f7   :  { %1850 = vtanh.f32 %v1586_v63 }
0x15f8   :  { %v1580_v9 = vpop.permute.xlu0 %1579 }
0x15f9   :  { %v1587_v1 = vadd.f32 %v1580_v9, %v1557_v0 }
0x15fb   :  { %1852 = vtanh.f32 %v1587_v1 }
0x15fc   :  { %v1582_v18 = vpop.permute.xlu1 %1581 }
0x15fd   :  { %v1588_v36 = vadd.f32 %v1582_v18, %v1558_v12 }
0x15ff   :  { %1854 = vtanh.f32 %v1588_v36 }
0x1604   :  { %v1851_v23 = vpop.eup %1850 }
0x1605   :  { %1595 = vrot.lane.b32.xlu0 %v1851_v23, %s1959_s15 }
0x1608   :  { %v1853_v39 = vpop.eup %1852 }
0x1609   :  { %1597 = vrot.lane.b32.xlu1 %v1853_v39, %s1959_s15 }
0x160c   :  { %v1855_v57 = vpop.eup %1854 }
0x160d   :  { %1599 = vrot.lane.b32.xlu0 %v1855_v57, %s1959_s15  ;;  %384 = vrot.lane.b32.xlu1 %v2116_v19, %s1959_s15  ;;  %v1550_v19 = vmul.f32 0.5, %v1839_v45 }
0x1611   :  { %386 = vrot.lane.b32.xlu0 %v2118_v20, %s1959_s15  ;;  %388 = vrot.lane.b32.xlu1 %v2125_v24, %s1959_s15  ;;  %v1553_v20 = vadd.f32 0.5, %v1550_v19  ;;  %v1551_v24 = vmul.f32 0.5, %v1841_v47 }
0x1615   :  { %794 = vrot.lane.b32.xlu0 %v2223_v35, %s1959_s15  ;;  %796 = vrot.lane.b32.xlu1 %v2225_v37, %s1959_s15  ;;  %v1554_v37 = vadd.f32 0.5, %v1551_v24 }
0x1619   :  { %798 = vrot.lane.b32.xlu0 %v2232_v50, %s1959_s15  ;;  %1202 = vrot.lane.b32.xlu1 %v2353_v60, %s1959_s15  ;;  %v1555_v60 = vadd.f32 0.5, %v1552_v56 }
0x161d   :  { %1204 = vrot.lane.b32.xlu0 %v2355_v34, %s1959_s15  ;;  %1206 = vrot.lane.b32.xlu1 %v2362_v54, %s1959_s15 }
0x1677   :  { %v1596_v46 = vpop.permute.xlu0 %1595 }
0x1678   :  { %v1604_v35 = vmul.f32 %v1596_v46, %v1553_v20 }
0x167a   :  { %1610 = vrot.lane.b32.xlu0 %v1604_v35, %s1959_s15 }
0x167b   :  { %v1598_v14 = vpop.permute.xlu1 %1597 }
0x167c   :  { %v1605_v50 = vmul.f32 %v1598_v14, %v1554_v37 }
0x167e   :  { %1612 = vrot.lane.b32.xlu1 %v1605_v50, %s1959_s15 }
0x167f   :  { %v385_v26 = vpop.permute.xlu1 %384  ;;  %v1600_v34 = vpop.permute.xlu0 %1599 }
0x1680   :  { %394 = vst.msk [vmem:[#allocation8] sm:$0xff] %vm393_vm4, %v385_v26  ;;  %v1606_v54 = vmul.f32 %v1600_v34, %v1555_v60 }
0x1682   :  { %1614 = vrot.lane.b32.xlu0 %v1606_v54, %s1959_s15 }
0x1683   :  { %v389_v41 = vpop.permute.xlu1 %388  ;;  %v387_v38 = vpop.permute.xlu0 %386 }
0x1684   :  { %397 = vst.msk [vmem:[#allocation8 + $0x40] sm:$0x3f] %vm396_vm5, %v389_v41 }
0x1685   :  { %395 = vst.msk [vmem:[#allocation8 + $0x20] sm:$0xff] %vm393_vm4, %v387_v38 }
0x1687   :  { %v797_v31 = vpop.permute.xlu1 %796  ;;  %v795_v15 = vpop.permute.xlu0 %794 }
0x1688   :  { %804 = vst.msk [vmem:[#allocation8 + $0x28] sm:$0xff] %vm393_vm4, %v797_v31  ;;  %803 = vst.msk [vmem:[#allocation8 + $0x8] sm:$0xff] %vm393_vm4, %v795_v15 }
0x168b   :  { %v1203_v33 = vpop.permute.xlu1 %1202  ;;  %v799_v6 = vpop.permute.xlu0 %798 }
0x168c   :  { %1211 = vst.msk [vmem:[#allocation8 + $0x10] sm:$0xff] %vm393_vm4, %v1203_v33 }
0x168d   :  { %805 = vst.msk [vmem:[#allocation8 + $0x48] sm:$0x3f] %vm396_vm5, %v799_v6 }
0x168f   :  { %v1207_v16 = vpop.permute.xlu1 %1206  ;;  %v1205_v61 = vpop.permute.xlu0 %1204 }
0x1690   :  { %1213 = vst.msk [vmem:[#allocation8 + $0x50] sm:$0x3f] %vm396_vm5, %v1207_v16 }
0x1691   :  { %1212 = vst.msk [vmem:[#allocation8 + $0x30] sm:$0xff] %vm393_vm4, %v1205_v61 }
0x16ec   :  { %v1611_v27 = vpop.permute.xlu0 %1610 }
0x16ed   :  { %1619 = vst.msk [vmem:[#allocation8 + $0x18] sm:$0xff] %vm393_vm4, %v1611_v27 }
0x16f0   :  { %v1613_v32 = vpop.permute.xlu1 %1612 }
0x16f1   :  { %1620 = vst.msk [vmem:[#allocation8 + $0x38] sm:$0xff] %vm393_vm4, %v1613_v32 }
0x16f4   :  { %v1615_v4 = vpop.permute.xlu0 %1614 }
0x16f5   :  { %1621 = vst.msk [vmem:[#allocation8 + $0x58] sm:$0x3f] %vm396_vm5, %v1615_v4 }
0x16f6   :  { %1943 = shalt.err (!%p1940_p5)
}
0x16f7   :  { %s1969_s6 = smov 512   ;;  %s1970_s7 = smov 32  }
0x16f8   :  { %1633 = dma.vmem_to_hbm [thread:$0]  %s1628_s2, 1536, %s2482_s3, [#allocation4], %s1969_s6, %s1969_s6, %s1970_s7  }
0x16f9   :  { %1956 = dma.done.wait [#allocation4], 1536  }
0x16fa   :  { %1957 = vsyncadd [#allocation4], 4294965760 }
0x16fb   :  { %1637 = vsyncpa [#allocation3], 1 }
0x16fc   :  { %1638 = vsyncpa [#allocation6], 1 }
0x16fd   :  { %1639 = vsyncpa [#allocation4], 1 }

</bundles_post_ra>
